<compile_context>
chip_gen: v7x
topology: tpu7x:2x2x1
jax: 0.10.0
libtpu: 0.0.40
codegen_flags: <defaults>
</compile_context>

<pallas_src>
from functools import partial

import jax
import jax.numpy as jnp
from jax.experimental import pallas as pl
from jax.experimental.pallas import tpu as pltpu

N_IN, N_OUT = 4, 8
K, STRIDE, PAD = 4, 2, 1
EPS = 1e-5  # InstanceNorm2d default eps


def _phase_taps(k, s, p):
    """Sub-pixel (phase) decomposition of a stride-s ConvTranspose along one axis.

    Returns (pad, taps) where `pad` is the symmetric zero padding applied to the input
    and taps[ph] is an ordered list of (kernel_index, padded_offset) such that
        out[s*o + ph] = sum_taps  w[..., kernel_index] * x_padded[o + padded_offset].
    """
    assert k == s + 2 * p, (
        "phase decomposition requires kernel_size == stride + 2*padding "
        f"(got k={k}, s={s}, p={p})")
    taps_k, deltas = [], []
    for ph in range(s):
        t = []
        for kk in range(k):
            d = kk - ph - p
            if d % s == 0:
                delta = d // s          # delta = out_coarse - in_index
                t.append((kk, delta))
                deltas.append(delta)
        taps_k.append(t)
    pad = max(max(deltas), max(-d for d in deltas), 0)
    taps = [[(kk, pad - delta) for (kk, delta) in t] for t in taps_k]
    return pad, taps


def _convt_in_relu_kernel(x_ref, wm_ref, gb_ref, o_ref, xp_s, patch_s, *,
                          cin, cout, h, w, pad, uoffs, nph):
    """Fused ConvTranspose2d -> InstanceNorm2d(affine) -> ReLU for the whole batch.

    x_ref   : (N, Cin, H, W)              unpadded input
    wm_ref  : (nph*Cout, nwin^2*Cin)      merged phase-packed weights (zeros in unused cols)
    gb_ref  : (Cout, 2)                   [:,0]=gamma, [:,1]=beta
    o_ref   : (N, Cout, nph*H*W)          phase-blocked, lane-dense output
    xp_s    : (Cin, H+2p, W+2p)           zero-padded input scratch (reused per sample)
    patch_s : (nwin^2*Cin, H*W)           shared im2col patch scratch (reused per sample)
    """
    n = x_ref.shape[0]
    hp, wp = h + 2 * pad, w + 2 * pad
    hw = h * w
    nwin = len(uoffs)
    f32 = jnp.float32

    # Zero the padded scratch once; only the interior is rewritten per sample, so the
    # zero border survives across samples.
    xp_s[...] = jnp.zeros((cin, hp, wp), f32)

    wm = wm_ref[...]                      # (nph*Cout, nwin^2*Cin), f32
    gamma = gb_ref[:, 0:1]                # (Cout, 1)
    beta = gb_ref[:, 1:2]                 # (Cout, 1)
    inv_cnt = 1.0 / (nph * hw)

    for smp in range(n):                  # static unroll; batch folded in one grid step
        # In-kernel zero padding (replaces the wrapper-side jnp.pad HLO).
        xp_s[:, pad:pad + h, pad:pad + w] = x_ref[smp]

        # Column-slab flattening: 3 relayouts instead of 9; every shifted window is then
        # a contiguous lane slice of one slab.
        slabs = [xp_s[:, :, b:b + w].reshape(cin, hp * w) for b in uoffs]

        # Build the shared im2col patch stack (no jnp.concatenate): each window goes to
        # a static sublane offset of the VMEM scratch.
        for wi, a in enumerate(uoffs):
            for wj in range(nwin):
                win = wi * nwin + wj
                patch_s[win * cin:(win + 1) * cin, :] = slabs[wj][:, a * w:a * w + hw]

        # ONE merged matmul for all output phases (unused window columns are zero in wm).
        y = jnp.dot(wm, patch_s[...], preferred_element_type=f32)   # (nph*Cout, H*W)

        # Single-pass InstanceNorm stats per channel over all phases & spatial positions
        # (biased variance, eps inside rsqrt — PyTorch semantics).
        s1 = jnp.sum(jnp.sum(y, axis=-1, keepdims=True).reshape(nph, cout, 1), axis=0)
        s2 = jnp.sum(jnp.sum(y * y, axis=-1, keepdims=True).reshape(nph, cout, 1), axis=0)
        mean = s1 * inv_cnt
        var = s2 * inv_cnt - mean * mean
        scale = gamma * jax.lax.rsqrt(var + EPS)      # (Cout, 1)
        shift = beta - mean * scale                   # (Cout, 1)

        # Fused affine + ReLU; each phase is an 8-row-aligned slice of y stored into a
        # 256-lane-aligned column slice of the lane-dense output (no relayout).
        for p in range(nph):
            yp = y[p * cout:(p + 1) * cout, :]                       # (Cout, H*W)
            o_ref[smp, :, p * hw:(p + 1) * hw] = jnp.maximum(
                yp * scale + shift, 0.0).astype(o_ref.dtype)


@jax.jit
def conv_transpose2d_block(x_nchw, weight, gamma, beta):
    """x_nchw: (N, Cin, H, W); weight: (Cin, Cout, K, K) (PyTorch ConvTranspose2d layout);
    gamma/beta: (Cout,). Returns (N, Cout, OH, OW)."""
    n, cin, h, w = x_nchw.shape
    cout = weight.shape[1]
    s = STRIDE
    oh = (h - 1) * s - 2 * PAD + K
    ow = (w - 1) * s - 2 * PAD + K
    nph = s * s

    pad, taps = _phase_taps(K, s, PAD)
    uoffs = tuple(sorted({off for t in taps for (_, off) in t}))   # unique window offsets
    nwin = len(uoffs)

    # Merged weight (phase-major rows, window/Cin-minor cols), zeros in window slots a
    # phase does not use:  wm[p*Cout + co, win*Cin + ci] = W[ci, co, kh, kw].
    wm4 = jnp.zeros((nph, cout, nwin * nwin, cin), jnp.float32)
    for ip in range(s):
        for jp in range(s):
            p = ip * s + jp
            for (kh, a) in taps[ip]:
                for (kw, b) in taps[jp]:
                    win = uoffs.index(a) * nwin + uoffs.index(b)
                    wm4 = wm4.at[p, :, win, :].set(
                        weight[:, :, kh, kw].T.astype(jnp.float32))
    wm = wm4.reshape(nph * cout, nwin * nwin * cin)

    gb = jnp.stack([gamma, beta], axis=1).astype(jnp.float32)        # (Cout, 2)

    kern = partial(_convt_in_relu_kernel, cin=cin, cout=cout, h=h, w=w,
                   pad=pad, uoffs=uoffs, nph=nph)
    out = pl.pallas_call(
        kern,
        out_shape=jax.ShapeDtypeStruct((n, cout, nph * h * w), jnp.float32),
        scratch_shapes=[
            pltpu.VMEM((cin, h + 2 * pad, w + 2 * pad), jnp.float32),
            pltpu.VMEM((nwin * nwin * cin, h * w), jnp.float32),
        ],
    )(x_nchw.astype(jnp.float32), wm, gb)

    # Pixel-shuffle decode (layout plumbing only): phase-blocked (co, ip, jp, oy, ox)
    # -> interleaved NCHW.
    out = out.reshape(n, cout, s, s, h, w)
    out = jnp.transpose(out, (0, 1, 4, 2, 5, 3))
    return out.reshape(n, cout, oh, ow)


def _reference(x, weight, gamma, beta):
    """Pure-JAX reference: ConvTranspose2d -> InstanceNorm2d(affine) -> ReLU."""
    k, s, p = K, STRIDE, PAD
    wc = jnp.transpose(jnp.flip(weight, axis=(2, 3)), (1, 0, 2, 3))  # OIHW, flipped
    y = jax.lax.conv_general_dilated(
        x, wc, window_strides=(1, 1),
        padding=[(k - 1 - p, k - 1 - p)] * 2,
        lhs_dilation=(s, s),
        dimension_numbers=("NCHW", "OIHW", "NCHW"))
    mean = jnp.mean(y, axis=(2, 3), keepdims=True)
    var = jnp.mean((y - mean) ** 2, axis=(2, 3), keepdims=True)
    yn = (y - mean) / jnp.sqrt(var + EPS)
    yn = yn * gamma.reshape(1, -1, 1, 1) + beta.reshape(1, -1, 1, 1)
    return jnp.maximum(yn, 0.0)


if __name__ == "__main__":
    key = jax.random.PRNGKey(0)
    k0, k1, k2, k3 = jax.random.split(key, 4)

    # Small deterministic inputs / params (synthetic, not a checkpoint).
    x = jax.random.normal(k0, (2, N_IN, 16, 16), jnp.float32)          # NCHW
    fan = N_IN * K * K
    weight = jax.random.normal(k1, (N_IN, N_OUT, K, K), jnp.float32) / jnp.sqrt(fan)
    gamma = 1.0 + 0.1 * jax.random.normal(k2, (N_OUT,), jnp.float32)   # InstanceNorm weight
    beta = 0.1 * jax.random.normal(k3, (N_OUT,), jnp.float32)          # InstanceNorm bias

    out = jax.block_until_ready(conv_transpose2d_block(x, weight, gamma, beta))
    ref = jax.block_until_ready(_reference(x, weight, gamma, beta))

    assert out.shape == (2, N_OUT, 32, 32), out.shape
    assert jnp.allclose(out, ref, rtol=1e-3, atol=1e-3), float(jnp.max(jnp.abs(out - ref)))

    print("KERNEL_OK")
</pallas_src>

<mosaic_0001>
module attributes {stable_mosaic.version = 11 : i64} {
  func.func @_convt_in_relu_kernel(%arg0: memref<2x4x16x16xf32, #tpu.memory_space<vmem>>, %arg1: memref<32x36xf32, #tpu.memory_space<vmem>>, %arg2: memref<8x2xf32, #tpu.memory_space<vmem>>, %arg3: memref<2x8x1024xf32, #tpu.memory_space<vmem>>, %arg4: memref<4x18x18xf32, #tpu.memory_space<vmem>>, %arg5: memref<36x256xf32, #tpu.memory_space<vmem>>) attributes {dimension_semantics = [], scalar_prefetch = 0 : i64, scratch_operands = 2 : i64, tpu.core_type = #tpu.core_type<tc>} {
    %cst = arith.constant 0.000000e+00 : f32
    %0 = vector.broadcast %cst : f32 to vector<4x18x18xf32>
    %c0 = arith.constant 0 : index
    %c0_0 = arith.constant 0 : index
    %c0_1 = arith.constant 0 : index
    %1 = vector.load %arg4[%c0, %c0_0, %c0_1] : memref<4x18x18xf32, #tpu.memory_space<vmem>>, vector<4x18x18xf32>
    tpu.vector_store %arg4[%c0, %c0_0, %c0_1], %0 {strides = array<i32>} : memref<4x18x18xf32, #tpu.memory_space<vmem>>, vector<4x18x18xf32>,
    %c0_2 = arith.constant 0 : index
    %c0_3 = arith.constant 0 : index
    %2 = vector.load %arg1[%c0_2, %c0_3] : memref<32x36xf32, #tpu.memory_space<vmem>>, vector<32x36xf32>
    %c0_4 = arith.constant 0 : index
    %c0_5 = arith.constant 0 : index
    %3 = vector.load %arg2[%c0_4, %c0_5] : memref<8x2xf32, #tpu.memory_space<vmem>>, vector<8x1xf32>
    %c0_6 = arith.constant 0 : index
    %c1 = arith.constant 1 : index
    %4 = vector.load %arg2[%c0_6, %c1] : memref<8x2xf32, #tpu.memory_space<vmem>>, vector<8x1xf32>
    %c0_7 = arith.constant 0 : index
    %c0_8 = arith.constant 0 : index
    %c0_9 = arith.constant 0 : index
    %c0_10 = arith.constant 0 : index
    %5 = vector.load %arg0[%c0_7, %c0_8, %c0_9, %c0_10] : memref<2x4x16x16xf32, #tpu.memory_space<vmem>>, vector<1x4x16x16xf32>
    %6 = vector.shape_cast %5 : vector<1x4x16x16xf32> to vector<4x16x16xf32>
    %c0_11 = arith.constant 0 : index
    %c1_12 = arith.constant 1 : index
    %c1_13 = arith.constant 1 : index
    %7 = vector.load %arg4[%c0_11, %c1_12, %c1_13] : memref<4x18x18xf32, #tpu.memory_space<vmem>>, vector<4x16x16xf32>
    tpu.vector_store %arg4[%c0_11, %c1_12, %c1_13], %6 {strides = array<i32>} : memref<4x18x18xf32, #tpu.memory_space<vmem>>, vector<4x16x16xf32>,
    %c0_14 = arith.constant 0 : index
    %c0_15 = arith.constant 0 : index
    %c0_16 = arith.constant 0 : index
    %8 = vector.load %arg4[%c0_14, %c0_15, %c0_16] : memref<4x18x18xf32, #tpu.memory_space<vmem>>, vector<4x18x16xf32>
    %9 = vector.shape_cast %8 : vector<4x18x16xf32> to vector<4x288xf32>
    %c0_17 = arith.constant 0 : index
    %c0_18 = arith.constant 0 : index
    %c1_19 = arith.constant 1 : index
    %10 = vector.load %arg4[%c0_17, %c0_18, %c1_19] : memref<4x18x18xf32, #tpu.memory_space<vmem>>, vector<4x18x16xf32>
    %11 = vector.shape_cast %10 : vector<4x18x16xf32> to vector<4x288xf32>
    %c0_20 = arith.constant 0 : index
    %c0_21 = arith.constant 0 : index
    %c2 = arith.constant 2 : index
    %12 = vector.load %arg4[%c0_20, %c0_21, %c2] : memref<4x18x18xf32, #tpu.memory_space<vmem>>, vector<4x18x16xf32>
    %13 = vector.shape_cast %12 : vector<4x18x16xf32> to vector<4x288xf32>
    %14 = vector.extract_strided_slice %9 {offsets = [0, 0], sizes = [4, 256], strides = [1, 1]} : vector<4x288xf32> to vector<4x256xf32>
    %c0_22 = arith.constant 0 : index
    %c0_23 = arith.constant 0 : index
    %15 = vector.load %arg5[%c0_22, %c0_23] : memref<36x256xf32, #tpu.memory_space<vmem>>, vector<4x256xf32>
    tpu.vector_store %arg5[%c0_22, %c0_23], %14 {strides = array<i32>} : memref<36x256xf32, #tpu.memory_space<vmem>>, vector<4x256xf32>,
    %16 = vector.extract_strided_slice %11 {offsets = [0, 0], sizes = [4, 256], strides = [1, 1]} : vector<4x288xf32> to vector<4x256xf32>
    %c4 = arith.constant 4 : index
    %c0_24 = arith.constant 0 : index
    %17 = vector.load %arg5[%c4, %c0_24] : memref<36x256xf32, #tpu.memory_space<vmem>>, vector<4x256xf32>
    tpu.vector_store %arg5[%c4, %c0_24], %16 {strides = array<i32>} : memref<36x256xf32, #tpu.memory_space<vmem>>, vector<4x256xf32>,
    %18 = vector.extract_strided_slice %13 {offsets = [0, 0], sizes = [4, 256], strides = [1, 1]} : vector<4x288xf32> to vector<4x256xf32>
    %c8 = arith.constant 8 : index
    %c0_25 = arith.constant 0 : index
    %19 = vector.load %arg5[%c8, %c0_25] : memref<36x256xf32, #tpu.memory_space<vmem>>, vector<4x256xf32>
    tpu.vector_store %arg5[%c8, %c0_25], %18 {strides = array<i32>} : memref<36x256xf32, #tpu.memory_space<vmem>>, vector<4x256xf32>,
    %20 = vector.extract_strided_slice %9 {offsets = [0, 16], sizes = [4, 256], strides = [1, 1]} : vector<4x288xf32> to vector<4x256xf32>
    %c12 = arith.constant 12 : index
    %c0_26 = arith.constant 0 : index
    %21 = vector.load %arg5[%c12, %c0_26] : memref<36x256xf32, #tpu.memory_space<vmem>>, vector<4x256xf32>
    tpu.vector_store %arg5[%c12, %c0_26], %20 {strides = array<i32>} : memref<36x256xf32, #tpu.memory_space<vmem>>, vector<4x256xf32>,
    %22 = vector.extract_strided_slice %11 {offsets = [0, 16], sizes = [4, 256], strides = [1, 1]} : vector<4x288xf32> to vector<4x256xf32>
    %c16 = arith.constant 16 : index
    %c0_27 = arith.constant 0 : index
    %23 = vector.load %arg5[%c16, %c0_27] : memref<36x256xf32, #tpu.memory_space<vmem>>, vector<4x256xf32>
    tpu.vector_store %arg5[%c16, %c0_27], %22 {strides = array<i32>} : memref<36x256xf32, #tpu.memory_space<vmem>>, vector<4x256xf32>,
    %24 = vector.extract_strided_slice %13 {offsets = [0, 16], sizes = [4, 256], strides = [1, 1]} : vector<4x288xf32> to vector<4x256xf32>
    %c20 = arith.constant 20 : index
    %c0_28 = arith.constant 0 : index
    %25 = vector.load %arg5[%c20, %c0_28] : memref<36x256xf32, #tpu.memory_space<vmem>>, vector<4x256xf32>
    tpu.vector_store %arg5[%c20, %c0_28], %24 {strides = array<i32>} : memref<36x256xf32, #tpu.memory_space<vmem>>, vector<4x256xf32>,
    %26 = vector.extract_strided_slice %9 {offsets = [0, 32], sizes = [4, 256], strides = [1, 1]} : vector<4x288xf32> to vector<4x256xf32>
    %c24 = arith.constant 24 : index
    %c0_29 = arith.constant 0 : index
    %27 = vector.load %arg5[%c24, %c0_29] : memref<36x256xf32, #tpu.memory_space<vmem>>, vector<4x256xf32>
    tpu.vector_store %arg5[%c24, %c0_29], %26 {strides = array<i32>} : memref<36x256xf32, #tpu.memory_space<vmem>>, vector<4x256xf32>,
    %28 = vector.extract_strided_slice %11 {offsets = [0, 32], sizes = [4, 256], strides = [1, 1]} : vector<4x288xf32> to vector<4x256xf32>
    %c28 = arith.constant 28 : index
    %c0_30 = arith.constant 0 : index
    %29 = vector.load %arg5[%c28, %c0_30] : memref<36x256xf32, #tpu.memory_space<vmem>>, vector<4x256xf32>
    tpu.vector_store %arg5[%c28, %c0_30], %28 {strides = array<i32>} : memref<36x256xf32, #tpu.memory_space<vmem>>, vector<4x256xf32>,
    %30 = vector.extract_strided_slice %13 {offsets = [0, 32], sizes = [4, 256], strides = [1, 1]} : vector<4x288xf32> to vector<4x256xf32>
    %c32 = arith.constant 32 : index
    %c0_31 = arith.constant 0 : index
    %31 = vector.load %arg5[%c32, %c0_31] : memref<36x256xf32, #tpu.memory_space<vmem>>, vector<4x256xf32>
    tpu.vector_store %arg5[%c32, %c0_31], %30 {strides = array<i32>} : memref<36x256xf32, #tpu.memory_space<vmem>>, vector<4x256xf32>,
    %c0_32 = arith.constant 0 : index
    %c0_33 = arith.constant 0 : index
    %32 = vector.load %arg5[%c0_32, %c0_33] : memref<36x256xf32, #tpu.memory_space<vmem>>, vector<36x256xf32>
    %cst_34 = arith.constant dense<0.000000e+00> : vector<32x256xf32>
    %33 = tpu.matmul %2, %32, %cst_34 {dimension_numbers = #tpu.dot_dimension_numbers<[1], [0], [0], [1], [0, 0, 1, 1], [], []>} : vector<32x36xf32>, vector<36x256xf32>, vector<32x256xf32> -> vector<32x256xf32>
    %cst_35 = arith.constant dense<0.000000e+00> : vector<32xf32>
    %34 = vector.multi_reduction <add>, %33, %cst_35 [1] : vector<32x256xf32> to vector<32xf32>
    %35 = vector.shape_cast %34 : vector<32xf32> to vector<32x1xf32>
    %36 = vector.shape_cast %35 : vector<32x1xf32> to vector<4x8x1xf32>
    %cst_36 = arith.constant dense<0.000000e+00> : vector<8x1xf32>
    %37 = vector.multi_reduction <add>, %36, %cst_36 [0] : vector<4x8x1xf32> to vector<8x1xf32>
    %38 = arith.mulf %33, %33 : vector<32x256xf32>
    %cst_37 = arith.constant dense<0.000000e+00> : vector<32xf32>
    %39 = vector.multi_reduction <add>, %38, %cst_37 [1] : vector<32x256xf32> to vector<32xf32>
    %40 = vector.shape_cast %39 : vector<32xf32> to vector<32x1xf32>
    %41 = vector.shape_cast %40 : vector<32x1xf32> to vector<4x8x1xf32>
    %cst_38 = arith.constant dense<0.000000e+00> : vector<8x1xf32>
    %42 = vector.multi_reduction <add>, %41, %cst_38 [0] : vector<4x8x1xf32> to vector<8x1xf32>
    %cst_39 = arith.constant 9.765625E-4 : f32
    %43 = vector.broadcast %cst_39 : f32 to vector<8x1xf32>
    %44 = arith.mulf %37, %43 : vector<8x1xf32>
    %cst_40 = arith.constant 9.765625E-4 : f32
    %45 = vector.broadcast %cst_40 : f32 to vector<8x1xf32>
    %46 = arith.mulf %42, %45 : vector<8x1xf32>
    %47 = arith.mulf %44, %44 : vector<8x1xf32>
    %48 = arith.subf %46, %47 : vector<8x1xf32>
    %cst_41 = arith.constant 9.99999974E-6 : f32
    %49 = vector.broadcast %cst_41 : f32 to vector<8x1xf32>
    %50 = arith.addf %48, %49 : vector<8x1xf32>
    %51 = math.rsqrt %50 : vector<8x1xf32>
    %52 = arith.mulf %3, %51 : vector<8x1xf32>
    %53 = arith.mulf %44, %52 : vector<8x1xf32>
    %54 = arith.subf %4, %53 : vector<8x1xf32>
    %55 = vector.extract_strided_slice %33 {offsets = [0, 0], sizes = [8, 256], strides = [1, 1]} : vector<32x256xf32> to vector<8x256xf32>
    %56 = vector.broadcast %52 : vector<8x1xf32> to vector<8x256xf32>
    %57 = arith.mulf %55, %56 : vector<8x256xf32>
    %58 = vector.broadcast %54 : vector<8x1xf32> to vector<8x256xf32>
    %59 = arith.addf %57, %58 : vector<8x256xf32>
    %cst_42 = arith.constant 0.000000e+00 : f32
    %60 = vector.broadcast %cst_42 : f32 to vector<8x256xf32>
    %61 = arith.maximumf %59, %60 : vector<8x256xf32>
    %c0_43 = arith.constant 0 : index
    %c0_44 = arith.constant 0 : index
    %c0_45 = arith.constant 0 : index
    %62 = vector.load %arg3[%c0_43, %c0_44, %c0_45] : memref<2x8x1024xf32, #tpu.memory_space<vmem>>, vector<1x8x256xf32>
    %63 = vector.shape_cast %62 : vector<1x8x256xf32> to vector<8x256xf32>
    %64 = vector.shape_cast %61 : vector<8x256xf32> to vector<1x8x256xf32>
    tpu.vector_store %arg3[%c0_43, %c0_44, %c0_45], %64 {strides = array<i32>} : memref<2x8x1024xf32, #tpu.memory_space<vmem>>, vector<1x8x256xf32>,
    %65 = vector.extract_strided_slice %33 {offsets = [8, 0], sizes = [8, 256], strides = [1, 1]} : vector<32x256xf32> to vector<8x256xf32>
    %66 = vector.broadcast %52 : vector<8x1xf32> to vector<8x256xf32>
    %67 = arith.mulf %65, %66 : vector<8x256xf32>
    %68 = vector.broadcast %54 : vector<8x1xf32> to vector<8x256xf32>
    %69 = arith.addf %67, %68 : vector<8x256xf32>
    %cst_46 = arith.constant 0.000000e+00 : f32
    %70 = vector.broadcast %cst_46 : f32 to vector<8x256xf32>
    %71 = arith.maximumf %69, %70 : vector<8x256xf32>
    %c0_47 = arith.constant 0 : index
    %c0_48 = arith.constant 0 : index
    %c256 = arith.constant 256 : index
    %72 = vector.load %arg3[%c0_47, %c0_48, %c256] : memref<2x8x1024xf32, #tpu.memory_space<vmem>>, vector<1x8x256xf32>
    %73 = vector.shape_cast %72 : vector<1x8x256xf32> to vector<8x256xf32>
    %74 = vector.shape_cast %71 : vector<8x256xf32> to vector<1x8x256xf32>
    tpu.vector_store %arg3[%c0_47, %c0_48, %c256], %74 {strides = array<i32>} : memref<2x8x1024xf32, #tpu.memory_space<vmem>>, vector<1x8x256xf32>,
    %75 = vector.extract_strided_slice %33 {offsets = [16, 0], sizes = [8, 256], strides = [1, 1]} : vector<32x256xf32> to vector<8x256xf32>
    %76 = vector.broadcast %52 : vector<8x1xf32> to vector<8x256xf32>
    %77 = arith.mulf %75, %76 : vector<8x256xf32>
    %78 = vector.broadcast %54 : vector<8x1xf32> to vector<8x256xf32>
    %79 = arith.addf %77, %78 : vector<8x256xf32>
    %cst_49 = arith.constant 0.000000e+00 : f32
    %80 = vector.broadcast %cst_49 : f32 to vector<8x256xf32>
    %81 = arith.maximumf %79, %80 : vector<8x256xf32>
    %c0_50 = arith.constant 0 : index
    %c0_51 = arith.constant 0 : index
    %c512 = arith.constant 512 : index
    %82 = vector.load %arg3[%c0_50, %c0_51, %c512] : memref<2x8x1024xf32, #tpu.memory_space<vmem>>, vector<1x8x256xf32>
    %83 = vector.shape_cast %82 : vector<1x8x256xf32> to vector<8x256xf32>
    %84 = vector.shape_cast %81 : vector<8x256xf32> to vector<1x8x256xf32>
    tpu.vector_store %arg3[%c0_50, %c0_51, %c512], %84 {strides = array<i32>} : memref<2x8x1024xf32, #tpu.memory_space<vmem>>, vector<1x8x256xf32>,
    %85 = vector.extract_strided_slice %33 {offsets = [24, 0], sizes = [8, 256], strides = [1, 1]} : vector<32x256xf32> to vector<8x256xf32>
    %86 = vector.broadcast %52 : vector<8x1xf32> to vector<8x256xf32>
    %87 = arith.mulf %85, %86 : vector<8x256xf32>
    %88 = vector.broadcast %54 : vector<8x1xf32> to vector<8x256xf32>
    %89 = arith.addf %87, %88 : vector<8x256xf32>
    %cst_52 = arith.constant 0.000000e+00 : f32
    %90 = vector.broadcast %cst_52 : f32 to vector<8x256xf32>
    %91 = arith.maximumf %89, %90 : vector<8x256xf32>
    %c0_53 = arith.constant 0 : index
    %c0_54 = arith.constant 0 : index
    %c768 = arith.constant 768 : index
    %92 = vector.load %arg3[%c0_53, %c0_54, %c768] : memref<2x8x1024xf32, #tpu.memory_space<vmem>>, vector<1x8x256xf32>
    %93 = vector.shape_cast %92 : vector<1x8x256xf32> to vector<8x256xf32>
    %94 = vector.shape_cast %91 : vector<8x256xf32> to vector<1x8x256xf32>
    tpu.vector_store %arg3[%c0_53, %c0_54, %c768], %94 {strides = array<i32>} : memref<2x8x1024xf32, #tpu.memory_space<vmem>>, vector<1x8x256xf32>,
    %c1_55 = arith.constant 1 : index
    %c0_56 = arith.constant 0 : index
    %c0_57 = arith.constant 0 : index
    %c0_58 = arith.constant 0 : index
    %95 = vector.load %arg0[%c1_55, %c0_56, %c0_57, %c0_58] : memref<2x4x16x16xf32, #tpu.memory_space<vmem>>, vector<1x4x16x16xf32>
    %96 = vector.shape_cast %95 : vector<1x4x16x16xf32> to vector<4x16x16xf32>
    %c0_59 = arith.constant 0 : index
    %c1_60 = arith.constant 1 : index
    %c1_61 = arith.constant 1 : index
    %97 = vector.load %arg4[%c0_59, %c1_60, %c1_61] : memref<4x18x18xf32, #tpu.memory_space<vmem>>, vector<4x16x16xf32>
    tpu.vector_store %arg4[%c0_59, %c1_60, %c1_61], %96 {strides = array<i32>} : memref<4x18x18xf32, #tpu.memory_space<vmem>>, vector<4x16x16xf32>,
    %c0_62 = arith.constant 0 : index
    %c0_63 = arith.constant 0 : index
    %c0_64 = arith.constant 0 : index
    %98 = vector.load %arg4[%c0_62, %c0_63, %c0_64] : memref<4x18x18xf32, #tpu.memory_space<vmem>>, vector<4x18x16xf32>
    %99 = vector.shape_cast %98 : vector<4x18x16xf32> to vector<4x288xf32>
    %c0_65 = arith.constant 0 : index
    %c0_66 = arith.constant 0 : index
    %c1_67 = arith.constant 1 : index
    %100 = vector.load %arg4[%c0_65, %c0_66, %c1_67] : memref<4x18x18xf32, #tpu.memory_space<vmem>>, vector<4x18x16xf32>
    %101 = vector.shape_cast %100 : vector<4x18x16xf32> to vector<4x288xf32>
    %c0_68 = arith.constant 0 : index
    %c0_69 = arith.constant 0 : index
    %c2_70 = arith.constant 2 : index
    %102 = vector.load %arg4[%c0_68, %c0_69, %c2_70] : memref<4x18x18xf32, #tpu.memory_space<vmem>>, vector<4x18x16xf32>
    %103 = vector.shape_cast %102 : vector<4x18x16xf32> to vector<4x288xf32>
    %104 = vector.extract_strided_slice %99 {offsets = [0, 0], sizes = [4, 256], strides = [1, 1]} : vector<4x288xf32> to vector<4x256xf32>
    %c0_71 = arith.constant 0 : index
    %c0_72 = arith.constant 0 : index
    %105 = vector.load %arg5[%c0_71, %c0_72] : memref<36x256xf32, #tpu.memory_space<vmem>>, vector<4x256xf32>
    tpu.vector_store %arg5[%c0_71, %c0_72], %104 {strides = array<i32>} : memref<36x256xf32, #tpu.memory_space<vmem>>, vector<4x256xf32>,
    %106 = vector.extract_strided_slice %101 {offsets = [0, 0], sizes = [4, 256], strides = [1, 1]} : vector<4x288xf32> to vector<4x256xf32>
    %c4_73 = arith.constant 4 : index
    %c0_74 = arith.constant 0 : index
    %107 = vector.load %arg5[%c4_73, %c0_74] : memref<36x256xf32, #tpu.memory_space<vmem>>, vector<4x256xf32>
    tpu.vector_store %arg5[%c4_73, %c0_74], %106 {strides = array<i32>} : memref<36x256xf32, #tpu.memory_space<vmem>>, vector<4x256xf32>,
    %108 = vector.extract_strided_slice %103 {offsets = [0, 0], sizes = [4, 256], strides = [1, 1]} : vector<4x288xf32> to vector<4x256xf32>
    %c8_75 = arith.constant 8 : index
    %c0_76 = arith.constant 0 : index
    %109 = vector.load %arg5[%c8_75, %c0_76] : memref<36x256xf32, #tpu.memory_space<vmem>>, vector<4x256xf32>
    tpu.vector_store %arg5[%c8_75, %c0_76], %108 {strides = array<i32>} : memref<36x256xf32, #tpu.memory_space<vmem>>, vector<4x256xf32>,
    %110 = vector.extract_strided_slice %99 {offsets = [0, 16], sizes = [4, 256], strides = [1, 1]} : vector<4x288xf32> to vector<4x256xf32>
    %c12_77 = arith.constant 12 : index
    %c0_78 = arith.constant 0 : index
    %111 = vector.load %arg5[%c12_77, %c0_78] : memref<36x256xf32, #tpu.memory_space<vmem>>, vector<4x256xf32>
    tpu.vector_store %arg5[%c12_77, %c0_78], %110 {strides = array<i32>} : memref<36x256xf32, #tpu.memory_space<vmem>>, vector<4x256xf32>,
    %112 = vector.extract_strided_slice %101 {offsets = [0, 16], sizes = [4, 256], strides = [1, 1]} : vector<4x288xf32> to vector<4x256xf32>
    %c16_79 = arith.constant 16 : index
    %c0_80 = arith.constant 0 : index
    %113 = vector.load %arg5[%c16_79, %c0_80] : memref<36x256xf32, #tpu.memory_space<vmem>>, vector<4x256xf32>
    tpu.vector_store %arg5[%c16_79, %c0_80], %112 {strides = array<i32>} : memref<36x256xf32, #tpu.memory_space<vmem>>, vector<4x256xf32>,
    %114 = vector.extract_strided_slice %103 {offsets = [0, 16], sizes = [4, 256], strides = [1, 1]} : vector<4x288xf32> to vector<4x256xf32>
    %c20_81 = arith.constant 20 : index
    %c0_82 = arith.constant 0 : index
    %115 = vector.load %arg5[%c20_81, %c0_82] : memref<36x256xf32, #tpu.memory_space<vmem>>, vector<4x256xf32>
    tpu.vector_store %arg5[%c20_81, %c0_82], %114 {strides = array<i32>} : memref<36x256xf32, #tpu.memory_space<vmem>>, vector<4x256xf32>,
    %116 = vector.extract_strided_slice %99 {offsets = [0, 32], sizes = [4, 256], strides = [1, 1]} : vector<4x288xf32> to vector<4x256xf32>
    %c24_83 = arith.constant 24 : index
    %c0_84 = arith.constant 0 : index
    %117 = vector.load %arg5[%c24_83, %c0_84] : memref<36x256xf32, #tpu.memory_space<vmem>>, vector<4x256xf32>
    tpu.vector_store %arg5[%c24_83, %c0_84], %116 {strides = array<i32>} : memref<36x256xf32, #tpu.memory_space<vmem>>, vector<4x256xf32>,
    %118 = vector.extract_strided_slice %101 {offsets = [0, 32], sizes = [4, 256], strides = [1, 1]} : vector<4x288xf32> to vector<4x256xf32>
    %c28_85 = arith.constant 28 : index
    %c0_86 = arith.constant 0 : index
    %119 = vector.load %arg5[%c28_85, %c0_86] : memref<36x256xf32, #tpu.memory_space<vmem>>, vector<4x256xf32>
    tpu.vector_store %arg5[%c28_85, %c0_86], %118 {strides = array<i32>} : memref<36x256xf32, #tpu.memory_space<vmem>>, vector<4x256xf32>,
    %120 = vector.extract_strided_slice %103 {offsets = [0, 32], sizes = [4, 256], strides = [1, 1]} : vector<4x288xf32> to vector<4x256xf32>
    %c32_87 = arith.constant 32 : index
    %c0_88 = arith.constant 0 : index
    %121 = vector.load %arg5[%c32_87, %c0_88] : memref<36x256xf32, #tpu.memory_space<vmem>>, vector<4x256xf32>
    tpu.vector_store %arg5[%c32_87, %c0_88], %120 {strides = array<i32>} : memref<36x256xf32, #tpu.memory_space<vmem>>, vector<4x256xf32>,
    %c0_89 = arith.constant 0 : index
    %c0_90 = arith.constant 0 : index
    %122 = vector.load %arg5[%c0_89, %c0_90] : memref<36x256xf32, #tpu.memory_space<vmem>>, vector<36x256xf32>
    %cst_91 = arith.constant dense<0.000000e+00> : vector<32x256xf32>
    %123 = tpu.matmul %2, %122, %cst_91 {dimension_numbers = #tpu.dot_dimension_numbers<[1], [0], [0], [1], [0, 0, 1, 1], [], []>} : vector<32x36xf32>, vector<36x256xf32>, vector<32x256xf32> -> vector<32x256xf32>
    %cst_92 = arith.constant dense<0.000000e+00> : vector<32xf32>
    %124 = vector.multi_reduction <add>, %123, %cst_92 [1] : vector<32x256xf32> to vector<32xf32>
    %125 = vector.shape_cast %124 : vector<32xf32> to vector<32x1xf32>
    %126 = vector.shape_cast %125 : vector<32x1xf32> to vector<4x8x1xf32>
    %cst_93 = arith.constant dense<0.000000e+00> : vector<8x1xf32>
    %127 = vector.multi_reduction <add>, %126, %cst_93 [0] : vector<4x8x1xf32> to vector<8x1xf32>
    %128 = arith.mulf %123, %123 : vector<32x256xf32>
    %cst_94 = arith.constant dense<0.000000e+00> : vector<32xf32>
    %129 = vector.multi_reduction <add>, %128, %cst_94 [1] : vector<32x256xf32> to vector<32xf32>
    %130 = vector.shape_cast %129 : vector<32xf32> to vector<32x1xf32>
    %131 = vector.shape_cast %130 : vector<32x1xf32> to vector<4x8x1xf32>
    %cst_95 = arith.constant dense<0.000000e+00> : vector<8x1xf32>
    %132 = vector.multi_reduction <add>, %131, %cst_95 [0] : vector<4x8x1xf32> to vector<8x1xf32>
    %cst_96 = arith.constant 9.765625E-4 : f32
    %133 = vector.broadcast %cst_96 : f32 to vector<8x1xf32>
    %134 = arith.mulf %127, %133 : vector<8x1xf32>
    %cst_97 = arith.constant 9.765625E-4 : f32
    %135 = vector.broadcast %cst_97 : f32 to vector<8x1xf32>
    %136 = arith.mulf %132, %135 : vector<8x1xf32>
    %137 = arith.mulf %134, %134 : vector<8x1xf32>
    %138 = arith.subf %136, %137 : vector<8x1xf32>
    %cst_98 = arith.constant 9.99999974E-6 : f32
    %139 = vector.broadcast %cst_98 : f32 to vector<8x1xf32>
    %140 = arith.addf %138, %139 : vector<8x1xf32>
    %141 = math.rsqrt %140 : vector<8x1xf32>
    %142 = arith.mulf %3, %141 : vector<8x1xf32>
    %143 = arith.mulf %134, %142 : vector<8x1xf32>
    %144 = arith.subf %4, %143 : vector<8x1xf32>
    %145 = vector.extract_strided_slice %123 {offsets = [0, 0], sizes = [8, 256], strides = [1, 1]} : vector<32x256xf32> to vector<8x256xf32>
    %146 = vector.broadcast %142 : vector<8x1xf32> to vector<8x256xf32>
    %147 = arith.mulf %145, %146 : vector<8x256xf32>
    %148 = vector.broadcast %144 : vector<8x1xf32> to vector<8x256xf32>
    %149 = arith.addf %147, %148 : vector<8x256xf32>
    %cst_99 = arith.constant 0.000000e+00 : f32
    %150 = vector.broadcast %cst_99 : f32 to vector<8x256xf32>
    %151 = arith.maximumf %149, %150 : vector<8x256xf32>
    %c1_100 = arith.constant 1 : index
    %c0_101 = arith.constant 0 : index
    %c0_102 = arith.constant 0 : index
    %152 = vector.load %arg3[%c1_100, %c0_101, %c0_102] : memref<2x8x1024xf32, #tpu.memory_space<vmem>>, vector<1x8x256xf32>
    %153 = vector.shape_cast %152 : vector<1x8x256xf32> to vector<8x256xf32>
    %154 = vector.shape_cast %151 : vector<8x256xf32> to vector<1x8x256xf32>
    tpu.vector_store %arg3[%c1_100, %c0_101, %c0_102], %154 {strides = array<i32>} : memref<2x8x1024xf32, #tpu.memory_space<vmem>>, vector<1x8x256xf32>,
    %155 = vector.extract_strided_slice %123 {offsets = [8, 0], sizes = [8, 256], strides = [1, 1]} : vector<32x256xf32> to vector<8x256xf32>
    %156 = vector.broadcast %142 : vector<8x1xf32> to vector<8x256xf32>
    %157 = arith.mulf %155, %156 : vector<8x256xf32>
    %158 = vector.broadcast %144 : vector<8x1xf32> to vector<8x256xf32>
    %159 = arith.addf %157, %158 : vector<8x256xf32>
    %cst_103 = arith.constant 0.000000e+00 : f32
    %160 = vector.broadcast %cst_103 : f32 to vector<8x256xf32>
    %161 = arith.maximumf %159, %160 : vector<8x256xf32>
    %c1_104 = arith.constant 1 : index
    %c0_105 = arith.constant 0 : index
    %c256_106 = arith.constant 256 : index
    %162 = vector.load %arg3[%c1_104, %c0_105, %c256_106] : memref<2x8x1024xf32, #tpu.memory_space<vmem>>, vector<1x8x256xf32>
    %163 = vector.shape_cast %162 : vector<1x8x256xf32> to vector<8x256xf32>
    %164 = vector.shape_cast %161 : vector<8x256xf32> to vector<1x8x256xf32>
    tpu.vector_store %arg3[%c1_104, %c0_105, %c256_106], %164 {strides = array<i32>} : memref<2x8x1024xf32, #tpu.memory_space<vmem>>, vector<1x8x256xf32>,
    %165 = vector.extract_strided_slice %123 {offsets = [16, 0], sizes = [8, 256], strides = [1, 1]} : vector<32x256xf32> to vector<8x256xf32>
    %166 = vector.broadcast %142 : vector<8x1xf32> to vector<8x256xf32>
    %167 = arith.mulf %165, %166 : vector<8x256xf32>
    %168 = vector.broadcast %144 : vector<8x1xf32> to vector<8x256xf32>
    %169 = arith.addf %167, %168 : vector<8x256xf32>
    %cst_107 = arith.constant 0.000000e+00 : f32
    %170 = vector.broadcast %cst_107 : f32 to vector<8x256xf32>
    %171 = arith.maximumf %169, %170 : vector<8x256xf32>
    %c1_108 = arith.constant 1 : index
    %c0_109 = arith.constant 0 : index
    %c512_110 = arith.constant 512 : index
    %172 = vector.load %arg3[%c1_108, %c0_109, %c512_110] : memref<2x8x1024xf32, #tpu.memory_space<vmem>>, vector<1x8x256xf32>
    %173 = vector.shape_cast %172 : vector<1x8x256xf32> to vector<8x256xf32>
    %174 = vector.shape_cast %171 : vector<8x256xf32> to vector<1x8x256xf32>
    tpu.vector_store %arg3[%c1_108, %c0_109, %c512_110], %174 {strides = array<i32>} : memref<2x8x1024xf32, #tpu.memory_space<vmem>>, vector<1x8x256xf32>,
    %175 = vector.extract_strided_slice %123 {offsets = [24, 0], sizes = [8, 256], strides = [1, 1]} : vector<32x256xf32> to vector<8x256xf32>
    %176 = vector.broadcast %142 : vector<8x1xf32> to vector<8x256xf32>
    %177 = arith.mulf %175, %176 : vector<8x256xf32>
    %178 = vector.broadcast %144 : vector<8x1xf32> to vector<8x256xf32>
    %179 = arith.addf %177, %178 : vector<8x256xf32>
    %cst_111 = arith.constant 0.000000e+00 : f32
    %180 = vector.broadcast %cst_111 : f32 to vector<8x256xf32>
    %181 = arith.maximumf %179, %180 : vector<8x256xf32>
    %c1_112 = arith.constant 1 : index
    %c0_113 = arith.constant 0 : index
    %c768_114 = arith.constant 768 : index
    %182 = vector.load %arg3[%c1_112, %c0_113, %c768_114] : memref<2x8x1024xf32, #tpu.memory_space<vmem>>, vector<1x8x256xf32>
    %183 = vector.shape_cast %182 : vector<1x8x256xf32> to vector<8x256xf32>
    %184 = vector.shape_cast %181 : vector<8x256xf32> to vector<1x8x256xf32>
    tpu.vector_store %arg3[%c1_112, %c0_113, %c768_114], %184 {strides = array<i32>} : memref<2x8x1024xf32, #tpu.memory_space<vmem>>, vector<1x8x256xf32>,
    return
  }
}

</mosaic_0001>

<bundles_post_ra>
// kernel: conv_transpose2d_block.1
= control target key start
LH: loop header
LB: loop body
LE: loop exit
PB: predicated region body
PF: predicated region fallthrough
CT: control target
= control target key end

     0   :  { %vm14_vm0 = vcmask 146432   ;;  %vm17_vm1 = vcmask 140288   ;;  %v2433_v2 = vmov 0.0   ;;  %s2434_s16 = smov 1   ;;  %vm73_vm2 = vcmask 138248   ;;  %s2437_s19 = smov 126   ;;  %s3803_s0 = inlined_call_operand.vmem [shape: f32[2,4,16,16], index: 0, kind: input, shape index: {}]   ;;  %s3804_s1 = inlined_call_operand.vmem [shape: f32[32,36], index: 1, kind: input, shape index: {}]   ;;  %s3805_s2 = inlined_call_operand.vmem [shape: f32[8,2], index: 2, kind: input, shape index: {}]   ;;  %s3806_s3 = inlined_call_operand.vmem [shape: f32[2,8,1024], index: 3, kind: output, shape index: {}]  }
   0x1   :  { %v35_v0 = vld [vmem:[%s3803_s0 + $0x10] sm:$0xff]  ;;  %v33_v1 = vld [vmem:[%s3803_s0] sm:$0xff]  ;;  %19 = vst.msk [vmem:[#allocation2 + $0x18] sm:$0xff] %vm14_vm0, %v2433_v2  ;;  %20 = vst.msk [vmem:[#allocation2 + $0x20] sm:$0xff] %vm14_vm0, %v2433_v2  ;;  %1085 = vmatprep.mubr.f32.mxu0 %v2433_v2  ;;  %2234 = vmatprep.mubr.f32.mxu1 %v2433_v2  ;;  %v2435_v23 = vmov 1983009808   ;;  %v99_v25 = vlaneseq }
   0x2   :  { %15 = vst.msk [vmem:[#allocation2] sm:$0xff] %vm14_vm0, %v2433_v2  ;;  %16 = vst.msk [vmem:[#allocation2 + $0x8] sm:$0xff] %vm14_vm0, %v2433_v2  ;;  %53 = vrot.lane.b32.xlu1 %v35_v0, %s2434_s16  ;;  %49 = vrot.lane.b32.xlu0 %v33_v1, %s2434_s16  ;;  %v36_v3 = vld [vmem:[%s3803_s0 + $0x18] sm:$0xff]  ;;  %v34_v4 = vld [vmem:[%s3803_s0 + $0x8] sm:$0xff]  ;;  %v97_v24 = vunpack.c.l.s4 %v2435_v23  ;;  %s2439_s20 = smov 32   ;;  %s2440_s21 = smov 16  }
   0x3   :  { %22 = vst.msk [vmem:[#allocation2 + $0x30] sm:$0xff] %vm14_vm0, %v2433_v2  ;;  %23 = vst.msk [vmem:[#allocation2 + $0x38] sm:$0xff] %vm14_vm0, %v2433_v2  ;;  %v38_v5 = vld [vmem:[%s3803_s0 + $0x28] sm:$0xff]  ;;  %v37_v6 = vld [vmem:[%s3803_s0 + $0x20] sm:$0xff]  ;;  %v2560_v33 = vshrl.u32 %v99_v25, 7  ;;  %s2441_s22 = smov 48  }
   0x4   :  { %25 = vst.msk [vmem:[#allocation2 + $0x48] sm:$0xff] %vm14_vm0, %v2433_v2  ;;  %26 = vst.msk [vmem:[#allocation2 + $0x50] sm:$0xff] %vm14_vm0, %v2433_v2  ;;  %v40_v7 = vld [vmem:[%s3803_s0 + $0x38] sm:$0xff]  ;;  %v39_v8 = vld [vmem:[%s3803_s0 + $0x30] sm:$0xff]  ;;  %v98_v32 = vunpack.c.0.s8 %v97_v24  ;;  %s2442_s23 = smov 64   ;;  %s2443_s24 = smov 80  }
   0x5   :  { %21 = vst.msk [vmem:[#allocation2 + $0x28] sm:$0x3] %vm17_vm1, %v2433_v2  ;;  %18 = vst.msk [vmem:[#allocation2 + $0x10] sm:$0x3] %vm17_vm1, %v2433_v2  ;;  %v2364_v9 = vld [vmem:[%s3803_s0 + $0x48] sm:$0xff]  ;;  %v2363_v10 = vld [vmem:[%s3803_s0 + $0x40] sm:$0xff] }
   0x6   :  { %24 = vst.msk [vmem:[#allocation2 + $0x40] sm:$0x3] %vm17_vm1, %v2433_v2  ;;  %27 = vst.msk [vmem:[#allocation2 + $0x58] sm:$0x3] %vm17_vm1, %v2433_v2  ;;  %55 = vrot.lane.b32.xlu1 %v36_v3, %s2434_s16  ;;  %51 = vrot.lane.b32.xlu0 %v34_v4, %s2434_s16  ;;  %v2366_v11 = vld [vmem:[%s3803_s0 + $0x58] sm:$0xff]  ;;  %v2365_v12 = vld [vmem:[%s3803_s0 + $0x50] sm:$0xff]  ;;  %v2578_v45 = vsub.s32 %v98_v32, %v2560_v33 }
   0x7   :  { %v2368_v13 = vld [vmem:[%s3803_s0 + $0x68] sm:$0xff]  ;;  %v2367_v14 = vld [vmem:[%s3803_s0 + $0x60] sm:$0xff]  ;;  %v2370_v15 = vld [vmem:[%s3803_s0 + $0x78] sm:$0xff]  ;;  %s2444_s25 = smov 96   ;;  %s2445_s26 = smov 112   ;;  %vm315_vm3 = vcmask 130048  }
   0x8   :  { %v2369_v16 = vld [vmem:[%s3803_s0 + $0x70] sm:$0xff]  ;;  %s2436_s0 = smov 127   ;;  %vm317_vm4 = vcmask 261120   ;;  %vm319_vm5 = vcmask 392192   ;;  %vm321_vm6 = vcmask 523264   ;;  %vm323_vm7 = vcmask 654336  }
   0x9   :  { %vm325_vm8 = vcmask 785408   ;;  %vm327_vm9 = vcmask 916480   ;;  %vm1014_vm10 = vcmask 1043456   ;;  %vm1001_vm11 = vcmask 293888  }
   0xa   :  { %59 = vrot.lane.b32.xlu1 %v38_v5, %s2434_s16  ;;  %57 = vrot.lane.b32.xlu0 %v37_v6, %s2434_s16 }
   0xe   :  { %63 = vrot.lane.b32.xlu1 %v40_v7, %s2434_s16  ;;  %61 = vrot.lane.b32.xlu0 %v39_v8, %s2434_s16 }
  0x12   :  { %1222 = vrot.lane.b32.xlu1 %v2364_v9, %s2434_s16  ;;  %1220 = vrot.lane.b32.xlu0 %v2363_v10, %s2434_s16 }
  0x16   :  { %1226 = vrot.lane.b32.xlu1 %v2366_v11, %s2434_s16  ;;  %1224 = vrot.lane.b32.xlu0 %v2365_v12, %s2434_s16 }
  0x1a   :  { %1230 = vrot.lane.b32.xlu1 %v2368_v13, %s2434_s16  ;;  %1228 = vrot.lane.b32.xlu0 %v2367_v14, %s2434_s16 }
  0x1e   :  { %1234 = vrot.lane.b32.xlu1 %v2370_v15, %s2434_s16  ;;  %1232 = vrot.lane.b32.xlu0 %v2369_v16, %s2434_s16 }
  0x74   :  { %v54_v17 = vpop.permute.xlu1 %53  ;;  %v50_v18 = vpop.permute.xlu0 %49 }
  0x75   :  { %76 = vst.msk [vmem:[#allocation2 + $0x19] sm:$0xff] %vm73_vm2, %v54_v17  ;;  %74 = vst.msk [vmem:[#allocation2 + $0x1] sm:$0xff] %vm73_vm2, %v50_v18 }
  0x78   :  { %v56_v19 = vpop.permute.xlu1 %55  ;;  %v52_v20 = vpop.permute.xlu0 %51 }
  0x79   :  { %77 = vst.msk [vmem:[#allocation2 + $0x21] sm:$0xff] %vm73_vm2, %v56_v19  ;;  %75 = vst.msk [vmem:[#allocation2 + $0x9] sm:$0xff] %vm73_vm2, %v52_v20 }
  0x7c   :  { %v60_v21 = vpop.permute.xlu1 %59  ;;  %v58_v22 = vpop.permute.xlu0 %57  ;;  %v2556_v30 = vld [vmem:[#allocation2] sm:$0xff]  ;;  %v2575_v44 = vld [vmem:[#allocation2 + $0x18] sm:$0xff] }
  0x7d   :  { %79 = vst.msk [vmem:[#allocation2 + $0x39] sm:$0xff] %vm73_vm2, %v60_v21  ;;  %78 = vst.msk [vmem:[#allocation2 + $0x31] sm:$0xff] %vm73_vm2, %v58_v22 }
  0x80   :  { %v64_v26 = vpop.permute.xlu1 %63  ;;  %v62_v27 = vpop.permute.xlu0 %61  ;;  %v86_v28 = vld [vmem:[#allocation2 + $0x20] sm:$0xff]  ;;  %v83_v29 = vld [vmem:[#allocation2 + $0x8] sm:$0xff]  ;;  %v2558_v31 = vld [vmem:[#allocation2 + $0x10] sm:$0x3] }
  0x81   :  { %81 = vst.msk [vmem:[#allocation2 + $0x51] sm:$0xff] %vm73_vm2, %v64_v26  ;;  %80 = vst.msk [vmem:[#allocation2 + $0x49] sm:$0xff] %vm73_vm2, %v62_v27  ;;  %357 = vrot.lane.b32.xlu1 %v86_v28, %s2436_s0  ;;  %351 = vrot.lane.b32.xlu0 %v83_v29, %s2436_s0  ;;  %v2580_v46 = vld [vmem:[#allocation2 + $0x28] sm:$0x3] }
  0x84   :  { %v89_v34 = vld [vmem:[#allocation2 + $0x38] sm:$0xff]  ;;  %v2562_v35 = vld [vmem:[#allocation2 + $0x30] sm:$0xff]  ;;  %v1223_v36 = vpop.permute.xlu1 %1222  ;;  %v1221_v37 = vpop.permute.xlu0 %1220  ;;  %v2564_v38 = vld [vmem:[#allocation2 + $0x40] sm:$0x3] }
  0x85   :  { %363 = vrot.lane.b32.xlu0 %v89_v34, %s2436_s0  ;;  %1244 = vst.msk [vmem:[#allocation2 + $0x1] sm:$0xff] %vm73_vm2, %v1221_v37  ;;  %1245 = vst.msk [vmem:[#allocation2 + $0x9] sm:$0xff] %vm73_vm2, %v1223_v36  ;;  %v230_v39 = vcombine.low %v2558_v31, %v2564_v38  ;;  %v162_v40 = vcombine.low %v83_v29, %v89_v34  ;;  %v94_v41 = vcombine.low %v2556_v30, %v2562_v35 }
  0x86   :  { %v163_v42 = vcombine.high %v83_v29, %v89_v34  ;;  %v95_v43 = vcombine.high %v2556_v30, %v2562_v35 }
  0x87   :  { %v2597_v57 = vrot.slane %v162_v40, %v2578_v45  ;;  %v2603_v59 = vrot.slane %v94_v41, %v2578_v45  ;;  %v2648_v15 = vrot.slane %v230_v39, %v2578_v45 }
  0x88   :  { %v92_v47 = vld [vmem:[#allocation2 + $0x50] sm:$0xff]  ;;  %v2582_v48 = vld [vmem:[#allocation2 + $0x48] sm:$0xff]  ;;  %v1227_v49 = vpop.permute.xlu1 %1226  ;;  %v1225_v50 = vpop.permute.xlu0 %1224  ;;  %v2584_v51 = vld [vmem:[#allocation2 + $0x58] sm:$0x3]  ;;  %v2609_v63 = vrot.slane %v163_v42, %v2578_v45  ;;  %v2615_v1 = vrot.slane %v95_v43, %v2578_v45 }
  0x89   :  { %623 = vrot.lane.b32.xlu0 %v83_v29, %s2437_s19  ;;  %369 = vrot.lane.b32.xlu1 %v92_v47, %s2436_s0  ;;  %1246 = vst.msk [vmem:[#allocation2 + $0x19] sm:$0xff] %vm73_vm2, %v1225_v50  ;;  %1247 = vst.msk [vmem:[#allocation2 + $0x21] sm:$0xff] %vm73_vm2, %v1227_v49  ;;  %v238_v52 = vcombine.low %v2580_v46, %v2584_v51  ;;  %v178_v53 = vcombine.low %v86_v28, %v92_v47 }
  0x8a   :  { %v110_v54 = vcombine.low %v2575_v44, %v2582_v48  ;;  %v179_v55 = vcombine.high %v86_v28, %v92_v47  ;;  %v111_v56 = vcombine.high %v2575_v44, %v2582_v48 }
  0x8b   :  { %v2600_v58 = vrot.slane %v178_v53, %v2578_v45  ;;  %v2639_v11 = vrot.slane %v238_v52, %v2578_v45 }
  0x8c   :  { %v2606_v60 = vrot.slane %v110_v54, %v2578_v45  ;;  %v1231_v61 = vpop.permute.xlu1 %1230  ;;  %v1229_v62 = vpop.permute.xlu0 %1228  ;;  %v2612_v0 = vrot.slane %v179_v55, %v2578_v45  ;;  %v2618_v3 = vrot.slane %v111_v56, %v2578_v45  ;;  %v1253_v16 = vld [vmem:[#allocation2 + $0x8] sm:$0xff]  ;;  %v2651_v17 = vld [vmem:[#allocation2] sm:$0xff] }
  0x8d   :  { %635 = vrot.lane.b32.xlu0 %v89_v34, %s2437_s19  ;;  %629 = vrot.lane.b32.xlu1 %v86_v28, %s2437_s19  ;;  %1248 = vst.msk [vmem:[#allocation2 + $0x31] sm:$0xff] %vm73_vm2, %v1229_v62  ;;  %1249 = vst.msk [vmem:[#allocation2 + $0x39] sm:$0xff] %vm73_vm2, %v1231_v61  ;;  %v195_v4 = vcombine.high %v2597_v57, %v2600_v58  ;;  %v194_v5 = vcombine.low %v2597_v57, %v2600_v58 }
  0x8e   :  { %v127_v6 = vcombine.high %v2603_v59, %v2606_v60  ;;  %v126_v7 = vcombine.low %v2603_v59, %v2606_v60  ;;  %v210_v8 = vcombine.low %v2609_v63, %v2612_v0  ;;  %v142_v9 = vcombine.low %v2615_v1, %v2618_v3 }
  0x8f   :  { %v211_v10 = vcombine.high %v2609_v63, %v2612_v0  ;;  %v143_v12 = vcombine.high %v2615_v1, %v2618_v3  ;;  %v246_v18 = vcombine.low %v2648_v15, %v2639_v11 }
  0x90   :  { %v1235_v13 = vpop.permute.xlu1 %1234  ;;  %v1233_v14 = vpop.permute.xlu0 %1232  ;;  %v1256_v23 = vld [vmem:[#allocation2 + $0x20] sm:$0xff]  ;;  %v2663_v25 = vld [vmem:[#allocation2 + $0x18] sm:$0xff] }
  0x91   :  { %349 = vrot.lane.b32.xlu0 %v2556_v30, %s2436_s0  ;;  %641 = vrot.lane.b32.xlu1 %v92_v47, %s2437_s19  ;;  %1250 = vst.msk [vmem:[#allocation2 + $0x49] sm:$0xff] %vm73_vm2, %v1233_v14  ;;  %1251 = vst.msk [vmem:[#allocation2 + $0x51] sm:$0xff] %vm73_vm2, %v1235_v13 }
  0x94   :  { %v1259_v19 = vld [vmem:[#allocation2 + $0x38] sm:$0xff]  ;;  %v2655_v20 = vld [vmem:[#allocation2 + $0x30] sm:$0xff] }
  0x95   :  { %361 = vrot.lane.b32.xlu0 %v2562_v35, %s2436_s0  ;;  %355 = vrot.lane.b32.xlu1 %v2575_v44, %s2436_s0  ;;  %v1332_v21 = vcombine.low %v1253_v16, %v1259_v19  ;;  %v1333_v22 = vcombine.high %v1253_v16, %v1259_v19  ;;  %v1265_v24 = vcombine.high %v2651_v17, %v2655_v20 }
  0x96   :  { %v1264_v61 = vcombine.low %v2651_v17, %v2655_v20 }
  0x97   :  { %v2672_v28 = vrot.slane %v1332_v21, %v2578_v45  ;;  %v2677_v36 = vrot.slane %v1333_v22, %v2578_v45  ;;  %v2680_v37 = vrot.slane %v1265_v24, %v2578_v45 }
  0x98   :  { %v1262_v26 = vld [vmem:[#allocation2 + $0x50] sm:$0xff]  ;;  %v2665_v27 = vld [vmem:[#allocation2 + $0x48] sm:$0xff] }
  0x99   :  { %621 = vrot.lane.b32.xlu0 %v2556_v30, %s2437_s19  ;;  %367 = vrot.lane.b32.xlu1 %v2582_v48, %s2436_s0  ;;  %v1348_v29 = vcombine.low %v1256_v23, %v1262_v26  ;;  %v1349_v32 = vcombine.high %v1256_v23, %v1262_v26  ;;  %v1281_v34 = vcombine.high %v2663_v25, %v2665_v27 }
  0x9a   :  { %v1280_v62 = vcombine.low %v2663_v25, %v2665_v27 }
  0x9b   :  { %v2683_v39 = vrot.slane %v1348_v29, %v2578_v45  ;;  %v2686_v30 = vrot.slane %v1349_v32, %v2578_v45  ;;  %v2689_v40 = vrot.slane %v1281_v34, %v2578_v45 }
  0x9d   :  { %633 = vrot.lane.b32.xlu0 %v2562_v35, %s2437_s19  ;;  %627 = vrot.lane.b32.xlu1 %v2575_v44, %s2437_s19  ;;  %v1364_v41 = vcombine.low %v2672_v28, %v2683_v39  ;;  %v1365_v42 = vcombine.high %v2672_v28, %v2683_v39  ;;  %v1380_v43 = vcombine.low %v2677_v36, %v2686_v30 }
  0x9e   :  { %v1312_v47 = vcombine.low %v2680_v37, %v2689_v40  ;;  %v1381_v49 = vcombine.high %v2677_v36, %v2686_v30  ;;  %v1313_v35 = vcombine.high %v2680_v37, %v2689_v40 }
  0xa1   :  { %353 = vrot.lane.b32.xlu0 %v2558_v31, %s2436_s0  ;;  %639 = vrot.lane.b32.xlu1 %v2582_v48, %s2437_s19  ;;  %v2755_v48 = vld [vmem:[#allocation2 + $0x28] sm:$0x3] }
  0xa5   :  { %365 = vrot.lane.b32.xlu0 %v2564_v38, %s2436_s0  ;;  %359 = vrot.lane.b32.xlu1 %v2580_v46, %s2436_s0 }
  0xa9   :  { %625 = vrot.lane.b32.xlu0 %v2558_v31, %s2437_s19  ;;  %371 = vrot.lane.b32.xlu1 %v2584_v51, %s2436_s0  ;;  %v2747_v31 = vld [vmem:[#allocation2 + $0x10] sm:$0x3] }
  0xad   :  { %637 = vrot.lane.b32.xlu0 %v2564_v38, %s2437_s19  ;;  %631 = vrot.lane.b32.xlu1 %v2580_v46, %s2437_s19  ;;  %v2438_v38 = vmov 1934713408   ;;  %v2753_v46 = vld [vmem:[#allocation2 + $0x40] sm:$0x3] }
  0xae   :  { %v129_v44 = vunpack.c.l.s4 %v2438_v38  ;;  %v1400_v29 = vcombine.low %v2747_v31, %v2753_v46 }
  0xb0   :  { %v130_v50 = vunpack.c.0.s8 %v129_v44  ;;  %v1407_v39 = vrot.slane %v1400_v29, %v2578_v45 }
  0xb1   :  { %643 = vrot.lane.b32.xlu1 %v2584_v51, %s2437_s19  ;;  %1514 = vrot.lane.b32.xlu0 %v1253_v16, %s2436_s0  ;;  %v2761_v51 = vld [vmem:[#allocation2 + $0x58] sm:$0x3] }
  0xb2   :  { %v2768_v52 = vsub.s32 %v130_v50, %v2560_v33  ;;  %v1408_v32 = vcombine.low %v2755_v48, %v2761_v51 }
  0xb4   :  { %v209_v53 = vrot.slane %v195_v4, %v2768_v52  ;;  %v2782_v54 = vrot.slane %v194_v5, %v2768_v52  ;;  %v141_v55 = vrot.slane %v127_v6, %v2768_v52  ;;  %v2797_v56 = vrot.slane %v126_v7, %v2768_v52 }
  0xb5   :  { %1520 = vrot.lane.b32.xlu1 %v1256_v23, %s2436_s0  ;;  %1526 = vrot.lane.b32.xlu0 %v1259_v19, %s2436_s0  ;;  %v218_v59 = vrot.slane %v210_v8, %v2768_v52  ;;  %v150_v5 = vrot.slane %v142_v9, %v2768_v52  ;;  %v1272_v6 = vrot.slane %v1264_v61, %v2578_v45 }
  0xb6   :  { %v226_v33 = vcombine.high %v2782_v54, %v2433_v2  ;;  %v227_v57 = vcombine.high %v209_v53, %v2433_v2  ;;  %v158_v58 = vcombine.high %v2797_v56, %v2433_v2  ;;  %v159_v60 = vcombine.high %v141_v55, %v2433_v2 }
  0xb7   :  { %v228_v4 = vcombine.high %v218_v59, %v2433_v2  ;;  %v1288_v7 = vrot.slane %v1280_v62, %v2578_v45  ;;  %v225_v13 = vrot.slane %v211_v10, %v2768_v52  ;;  %v160_v14 = vcombine.high %v150_v5, %v2433_v2 }
  0xb8   :  { %v2848_v63 = vrot.slane %v246_v18, %v2768_v52  ;;  %v2863_v3 = vrot.slane %v1364_v41, %v2768_v52  ;;  %v1395_v61 = vrot.slane %v1381_v49, %v2768_v52 }
  0xb9   :  { %1786 = vrot.lane.b32.xlu0 %v1253_v16, %s2437_s19  ;;  %1532 = vrot.lane.b32.xlu1 %v1262_v26, %s2436_s0  ;;  %v1296_v0 = vcombine.low %v1272_v6, %v1288_v7 }
  0xba   :  { %v254_v1 = vcombine.high %v2848_v63, %v2433_v2  ;;  %v1396_v18 = vcombine.high %v2863_v3, %v2433_v2 }
  0xbb   :  { %v2866_v11 = vrot.slane %v1296_v0, %v2768_v52 }
  0xbd   :  { %1798 = vrot.lane.b32.xlu0 %v1259_v19, %s2437_s19  ;;  %1792 = vrot.lane.b32.xlu1 %v1256_v23, %s2437_s19  ;;  %v157_v19 = vrot.slane %v143_v12, %v2768_v52  ;;  %v1328_v22 = vcombine.high %v2866_v11, %v2433_v2  ;;  %v1297_v23 = vcombine.high %v1272_v6, %v1288_v7 }
  0xbe   :  { %v2945_v6 = vrot.slane %v1313_v35, %v2768_v52  ;;  %v1399_v35 = vcombine.high %v1395_v61, %v2433_v2 }
  0xbf   :  { %v161_v21 = vcombine.high %v157_v19, %v2433_v2 }
  0xc1   :  { %1512 = vrot.lane.b32.xlu0 %v2651_v17, %s2436_s0  ;;  %1804 = vrot.lane.b32.xlu1 %v1262_v26, %s2437_s19  ;;  %v1379_v26 = vrot.slane %v1365_v42, %v2768_v52  ;;  %v1415_v42 = vrot.slane %v1408_v32, %v2578_v45 }
  0xc3   :  { %v1397_v38 = vcombine.high %v1379_v26, %v2433_v2 }
  0xc5   :  { %1524 = vrot.lane.b32.xlu0 %v2655_v20, %s2436_s0  ;;  %1518 = vrot.lane.b32.xlu1 %v2663_v25, %s2436_s0 }
  0xc9   :  { %1784 = vrot.lane.b32.xlu0 %v2651_v17, %s2437_s19  ;;  %1530 = vrot.lane.b32.xlu1 %v2665_v27, %s2436_s0  ;;  %v229_v17 = vcombine.high %v225_v13, %v2433_v2 }
  0xcd   :  { %1796 = vrot.lane.b32.xlu0 %v2655_v20, %s2437_s19  ;;  %1790 = vrot.lane.b32.xlu1 %v2663_v25, %s2437_s19 }
  0xd1   :  { %1516 = vrot.lane.b32.xlu0 %v2747_v31, %s2436_s0  ;;  %1802 = vrot.lane.b32.xlu1 %v2665_v27, %s2437_s19  ;;  %v1311_v27 = vrot.slane %v1297_v23, %v2768_v52 }
  0xd3   :  { %v1329_v28 = vcombine.high %v1311_v27, %v2433_v2 }
  0xd5   :  { %1528 = vrot.lane.b32.xlu0 %v2753_v46, %s2436_s0  ;;  %1522 = vrot.lane.b32.xlu1 %v2755_v48, %s2436_s0 }
  0xd9   :  { %1788 = vrot.lane.b32.xlu0 %v2747_v31, %s2437_s19  ;;  %1534 = vrot.lane.b32.xlu1 %v2761_v51, %s2436_s0 }
  0xdd   :  { %1800 = vrot.lane.b32.xlu0 %v2753_v46, %s2437_s19  ;;  %1794 = vrot.lane.b32.xlu1 %v2755_v48, %s2437_s19  ;;  %v1388_v46 = vrot.slane %v1380_v43, %v2768_v52  ;;  %v1320_v48 = vrot.slane %v1312_v47, %v2768_v52 }
  0xdf   :  { %v1330_v43 = vcombine.high %v1320_v48, %v2433_v2 }
  0xe1   :  { %288 = vrot.lane.b32.xlu0 %v209_v53, %s2439_s20  ;;  %1806 = vrot.lane.b32.xlu1 %v2761_v51, %s2437_s19 }
  0xe5   :  { %284 = vrot.lane.b32.xlu0 %v226_v33, %s2440_s21  ;;  %260 = vrot.lane.b32.xlu1 %v141_v55, %s2439_s20  ;;  %v1398_v55 = vcombine.high %v1388_v46, %v2433_v2 }
  0xe9   :  { %292 = vrot.lane.b32.xlu0 %v227_v57, %s2441_s22  ;;  %256 = vrot.lane.b32.xlu1 %v158_v58, %s2440_s21  ;;  %v1416_v57 = vcombine.low %v1407_v39, %v1415_v42 }
  0xeb   :  { %v2948_v7 = vrot.slane %v1416_v57, %v2768_v52 }
  0xed   :  { %296 = vrot.lane.b32.xlu0 %v218_v59, %s2442_s23  ;;  %264 = vrot.lane.b32.xlu1 %v159_v60, %s2441_s22 }
  0xf1   :  { %300 = vrot.lane.b32.xlu0 %v228_v4, %s2443_s24  ;;  %268 = vrot.lane.b32.xlu1 %v150_v5, %s2442_s23 }
  0xf3   :  { %v2826_v8 = vpop.permute.xlu0 %351  ;;  %v2835_v9 = vpop.permute.xlu1 %357 }
  0xf5   :  { %304 = vrot.lane.b32.xlu0 %v225_v13, %s2444_s25  ;;  %272 = vrot.lane.b32.xlu1 %v160_v14, %s2443_s24 }
  0xf7   :  { %v2837_v16 = vpop.permute.xlu0 %363 }
  0xf8   :  { %v453_v58 = vcombine.low %v2826_v8, %v2837_v16 }
  0xf9   :  { %308 = vrot.lane.b32.xlu0 %v229_v17, %s2445_s26  ;;  %276 = vrot.lane.b32.xlu1 %v157_v19, %s2444_s25 }
  0xfa   :  { %v2951_v13 = vrot.slane %v453_v58, %v2578_v45 }
  0xfb   :  { %v2852_v10 = vpop.permute.xlu1 %369  ;;  %v2854_v20 = vpop.permute.xlu0 %623 }
  0xfc   :  { %v469_v50 = vcombine.low %v2835_v9, %v2852_v10  ;;  %v470_v37 = vcombine.high %v2835_v9, %v2852_v10  ;;  %v454_v10 = vcombine.high %v2826_v8, %v2837_v16 }
  0xfd   :  { %280 = vrot.lane.b32.xlu0 %v161_v21, %s2445_s26  ;;  %312 = vrot.lane.b32.xlu1 %v254_v1, %s2440_s21 }
  0xfe   :  { %v2928_v59 = vrot.slane %v469_v50, %v2578_v45  ;;  %v468_v39 = vrot.slane %v454_v10, %v2578_v45 }
  0xff   :  { %v2870_v12 = vpop.permute.xlu1 %629  ;;  %v2872_v15 = vpop.permute.xlu0 %635 }
 0x100   :  { %v725_v36 = vcombine.low %v2854_v20, %v2872_v15  ;;  %v486_v17 = vcombine.high %v2951_v13, %v2928_v59 }
 0x101   :  { %1454 = vrot.lane.b32.xlu1 %v1396_v18, %s2440_s21  ;;  %1426 = vrot.lane.b32.xlu0 %v1328_v22, %s2440_s21  ;;  %v1424_v18 = vcombine.high %v2948_v7, %v2433_v2 }
 0x102   :  { %v2983_v22 = vrot.slane %v725_v36, %v2578_v45  ;;  %v2994_v32 = vrot.slane %v486_v17, %v2768_v52 }
 0x103   :  { %v2880_v24 = vpop.permute.xlu1 %641  ;;  %v2882_v25 = vpop.permute.xlu0 %349 }
 0x104   :  { %v741_v60 = vcombine.low %v2870_v12, %v2880_v24  ;;  %v742_v29 = vcombine.high %v2870_v12, %v2880_v24  ;;  %v726_v12 = vcombine.high %v2854_v20, %v2872_v15 }
 0x105   :  { %1458 = vrot.lane.b32.xlu1 %v1379_v26, %s2439_s20  ;;  %1430 = vrot.lane.b32.xlu0 %v1311_v27, %s2439_s20  ;;  %v484_v27 = vrot.slane %v470_v37, %v2578_v45 }
 0x106   :  { %v2966_v40 = vrot.slane %v741_v60, %v2578_v45 }
 0x107   :  { %v356_v34 = vpop.permute.xlu1 %355  ;;  %v2895_v41 = vpop.permute.xlu0 %361 }
 0x108   :  { %v386_v47 = vcombine.high %v2882_v25, %v2895_v41  ;;  %v385_v23 = vcombine.low %v2882_v25, %v2895_v41  ;;  %v758_v8 = vcombine.high %v2983_v22, %v2966_v40  ;;  %v757_v10 = vcombine.low %v2983_v22, %v2966_v40 }
 0x109   :  { %1462 = vrot.lane.b32.xlu1 %v1397_v38, %s2441_s22  ;;  %1434 = vrot.lane.b32.xlu0 %v1329_v28, %s2441_s22 }
 0x10a   :  { %v2956_v49 = vrot.slane %v386_v47, %v2578_v45  ;;  %v393_v24 = vrot.slane %v385_v23, %v2578_v45  ;;  %v3023_v15 = vrot.slane %v758_v8, %v2768_v52 }
 0x10b   :  { %v368_v44 = vpop.permute.xlu1 %367  ;;  %v2903_v31 = vpop.permute.xlu0 %621 }
 0x10c   :  { %v402_v51 = vcombine.high %v356_v34, %v368_v44  ;;  %v401_v19 = vcombine.low %v356_v34, %v368_v44  ;;  %v756_v44 = vrot.slane %v742_v29, %v2578_v45 }
 0x10d   :  { %1466 = vrot.lane.b32.xlu1 %v1388_v46, %s2442_s23  ;;  %1438 = vrot.lane.b32.xlu0 %v1320_v48, %s2442_s23  ;;  %v502_v46 = vcombine.high %v468_v39, %v484_v27 }
 0x10e   :  { %v2937_v62 = vrot.slane %v402_v51, %v2578_v45  ;;  %v409_v16 = vrot.slane %v401_v19, %v2578_v45 }
 0x10f   :  { %v628_v53 = vpop.permute.xlu1 %627  ;;  %v2917_v33 = vpop.permute.xlu0 %633  ;;  %v3042_v60 = vrot.slane %v502_v46, %v2768_v52 }
 0x110   :  { %v658_v14 = vcombine.high %v2903_v31, %v2917_v33  ;;  %v433_v9 = vcombine.low %v2956_v49, %v2937_v62  ;;  %v657_v42 = vcombine.low %v2903_v31, %v2917_v33  ;;  %v418_v48 = vcombine.high %v393_v24, %v409_v16 }
 0x111   :  { %1470 = vrot.lane.b32.xlu1 %v1398_v55, %s2443_s24  ;;  %1442 = vrot.lane.b32.xlu0 %v1330_v43, %s2443_s24  ;;  %v417_v17 = vcombine.low %v393_v24, %v409_v16 }
 0x112   :  { %v672_v26 = vrot.slane %v658_v14, %v2578_v45  ;;  %v3004_v38 = vrot.slane %v433_v9, %v2768_v52  ;;  %v665_v33 = vrot.slane %v657_v42, %v2578_v45  ;;  %v3039_v47 = vrot.slane %v418_v48, %v2768_v52 }
 0x113   :  { %v640_v4 = vpop.permute.xlu1 %639  ;;  %v2939_v5 = vpop.permute.xlu0 %353  ;;  %v518_v48 = vcombine.high %v2994_v32, %v2433_v2 }
 0x114   :  { %v674_v30 = vcombine.high %v628_v53, %v640_v4  ;;  %v673_v25 = vcombine.low %v628_v53, %v640_v4  ;;  %v740_v53 = vrot.slane %v726_v12, %v2578_v45  ;;  %v501_v4 = vcombine.low %v468_v39, %v484_v27 }
 0x115   :  { %1474 = vrot.lane.b32.xlu1 %v1395_v61, %s2444_s25  ;;  %1446 = vrot.lane.b32.xlu0 %v2945_v6, %s2444_s25  ;;  %v485_v61 = vcombine.low %v2951_v13, %v2928_v59 }
 0x116   :  { %v688_v0 = vrot.slane %v674_v30, %v2578_v45  ;;  %v681_v50 = vrot.slane %v673_v25, %v2578_v45  ;;  %v774_v55 = vcombine.high %v740_v53, %v756_v44  ;;  %v773_v13 = vcombine.low %v740_v53, %v756_v44 }
 0x117   :  { %v2972_v21 = vpop.permute.xlu1 %359  ;;  %v2974_v1 = vpop.permute.xlu0 %365  ;;  %v3065_v59 = vrot.slane %v485_v61, %v2768_v52  ;;  %v509_v9 = vrot.slane %v501_v4, %v2768_v52  ;;  %v3090_v25 = vrot.slane %v417_v17, %v2768_v52  ;;  %v450_v17 = vcombine.high %v3039_v47, %v2433_v2 }
 0x118   :  { %v705_v28 = vcombine.low %v672_v26, %v688_v0  ;;  %v690_v43 = vcombine.high %v665_v33, %v681_v50  ;;  %v706_v36 = vcombine.high %v672_v26, %v688_v0  ;;  %v3055_v37 = vrot.slane %v774_v55, %v2768_v52 }
 0x119   :  { %1478 = vrot.lane.b32.xlu1 %v1399_v35, %s2445_s26  ;;  %1482 = vrot.lane.b32.xlu0 %v1424_v18, %s2440_s21  ;;  %v517_v23 = vcombine.high %v3065_v59, %v2433_v2  ;;  %v434_v26 = vcombine.high %v2956_v49, %v2937_v62  ;;  %v689_v27 = vcombine.low %v665_v33, %v681_v50 }
 0x11a   :  { %v3026_v31 = vrot.slane %v705_v28, %v2768_v52  ;;  %v3058_v35 = vrot.slane %v690_v43, %v2768_v52  ;;  %v3072_v18 = vrot.slane %v706_v36, %v2768_v52  ;;  %v781_v16 = vrot.slane %v773_v13, %v2768_v52 }
 0x11b   :  { %v2999_v34 = vpop.permute.xlu1 %371  ;;  %v3001_v41 = vpop.permute.xlu0 %625  ;;  %v449_v62 = vcombine.high %v3090_v25, %v2433_v2  ;;  %v3101_v49 = vrot.slane %v434_v26, %v2768_v52  ;;  %v3104_v28 = vrot.slane %v757_v10, %v2768_v52  ;;  %v3107_v39 = vrot.slane %v689_v27, %v2768_v52 }
 0x11c   :  { %v529_v46 = vcombine.low %v2972_v21, %v2999_v34  ;;  %v519_v33 = vcombine.high %v509_v9, %v2433_v2  ;;  %v521_v55 = vcombine.low %v2939_v5, %v2974_v1  ;;  %v791_v4 = vcombine.high %v781_v16, %v2433_v2 }
 0x11d   :  { %579 = vrot.lane.b32.xlu0 %v2994_v32, %s2439_s20  ;;  %559 = vrot.lane.b32.xlu1 %v3004_v38, %s2442_s23  ;;  %v789_v42 = vcombine.high %v3104_v28, %v2433_v2  ;;  %v721_v44 = vcombine.high %v3107_v39, %v2433_v2  ;;  %v790_v32 = vcombine.high %v3023_v15, %v2433_v2 }
 0x11e   :  { %v536_v21 = vrot.slane %v529_v46, %v2578_v45  ;;  %v528_v1 = vrot.slane %v521_v55, %v2578_v45 }
 0x11f   :  { %v3018_v51 = vpop.permute.xlu1 %631  ;;  %v3020_v20 = vpop.permute.xlu0 %637 }
 0x120   :  { %v793_v5 = vcombine.low %v3001_v41, %v3020_v20 }
 0x121   :  { %851 = vrot.lane.b32.xlu0 %v3023_v15, %s2439_s20  ;;  %831 = vrot.lane.b32.xlu1 %v3026_v31, %s2442_s23  ;;  %v451_v15 = vcombine.high %v3004_v38, %v2433_v2  ;;  %v723_v38 = vcombine.high %v3026_v31, %v2433_v2  ;;  %v520_v31 = vcombine.high %v3042_v60, %v2433_v2 }
 0x122   :  { %v800_v41 = vrot.slane %v793_v5, %v2578_v45 }
 0x123   :  { %v3034_v57 = vpop.permute.xlu1 %643  ;;  %v3036_v58 = vpop.permute.xlu0 %1514 }
 0x124   :  { %v801_v43 = vcombine.low %v3018_v51, %v3034_v57  ;;  %v537_v57 = vcombine.low %v528_v1, %v536_v21 }
 0x125   :  { %551 = vrot.lane.b32.xlu0 %v3039_v47, %s2439_s20  ;;  %595 = vrot.lane.b32.xlu1 %v3042_v60, %s2444_s25  ;;  %v722_v47 = vcombine.high %v3058_v35, %v2433_v2  ;;  %v792_v60 = vcombine.high %v3055_v37, %v2433_v2 }
 0x126   :  { %v808_v51 = vrot.slane %v801_v43, %v2578_v45 }
 0x127   :  { %v3050_v30 = vpop.permute.xlu1 %1520  ;;  %v3052_v14 = vpop.permute.xlu0 %1526 }
 0x128   :  { %v809_v20 = vcombine.low %v800_v41, %v808_v51  ;;  %v1616_v27 = vcombine.low %v3036_v58, %v3052_v14  ;;  %v724_v41 = vcombine.high %v3072_v18, %v2433_v2 }
 0x129   :  { %867 = vrot.lane.b32.xlu1 %v3055_v37, %s2444_s25  ;;  %823 = vrot.lane.b32.xlu0 %v3058_v35, %s2439_s20 }
 0x12b   :  { %v3067_v19 = vpop.permute.xlu1 %1532  ;;  %v3069_v0 = vpop.permute.xlu0 %1786 }
 0x12c   :  { %v1632_v10 = vcombine.low %v3050_v30, %v3067_v19 }
 0x12d   :  { %839 = vrot.lane.b32.xlu1 %v3072_v18, %s2444_s25  ;;  %587 = vrot.lane.b32.xlu0 %v509_v9, %s2442_s23  ;;  %v3163_v9 = vrot.slane %v537_v57, %v2768_v52 }
 0x12f   :  { %v3084_v29 = vpop.permute.xlu1 %1792  ;;  %v3086_v8 = vpop.permute.xlu0 %1798  ;;  %v545_v46 = vcombine.high %v3163_v9, %v2433_v2 }
 0x130   :  { %v1888_v51 = vcombine.low %v3069_v0, %v3086_v8 }
 0x131   :  { %575 = vrot.lane.b32.xlu1 %v517_v23, %s2440_s21  ;;  %859 = vrot.lane.b32.xlu0 %v781_v16, %s2442_s23  ;;  %v3180_v16 = vrot.slane %v809_v20, %v2768_v52 }
 0x133   :  { %v3094_v40 = vpop.permute.xlu1 %1804  ;;  %v3096_v22 = vpop.permute.xlu0 %1512  ;;  %v817_v55 = vcombine.high %v3180_v16, %v2433_v2 }
 0x134   :  { %v1904_v21 = vcombine.low %v3084_v29, %v3094_v40 }
 0x135   :  { %547 = vrot.lane.b32.xlu1 %v449_v62, %s2440_s21  ;;  %567 = vrot.lane.b32.xlu0 %v3101_v49, %s2444_s25  ;;  %v1640_v62 = vrot.slane %v1632_v10, %v2578_v45 }
 0x136   :  { %v1912_v20 = vrot.slane %v1904_v21, %v2578_v45 }
 0x137   :  { %v3112_v12 = vpop.permute.xlu1 %1518  ;;  %v3114_v24 = vpop.permute.xlu0 %1524 }
 0x139   :  { %847 = vrot.lane.b32.xlu0 %v789_v42, %s2440_s21  ;;  %819 = vrot.lane.b32.xlu1 %v721_v44, %s2440_s21 }
 0x13b   :  { %v3126_v50 = vpop.permute.xlu1 %1530  ;;  %v3128_v53 = vpop.permute.xlu0 %1784 }
 0x13c   :  { %v1564_v42 = vcombine.low %v3112_v12, %v3126_v50 }
 0x13d   :  { %591 = vrot.lane.b32.xlu0 %v519_v33, %s2443_s24  ;;  %583 = vrot.lane.b32.xlu1 %v518_v48, %s2441_s22  ;;  %v1624_v48 = vrot.slane %v1616_v27, %v2578_v45  ;;  %v1548_v33 = vcombine.low %v3096_v22, %v3114_v24 }
 0x13f   :  { %v3140_v34 = vpop.permute.xlu1 %1790  ;;  %v3142_v61 = vpop.permute.xlu0 %1796  ;;  %v1648_v43 = vcombine.low %v1624_v48, %v1640_v62  ;;  %v1556_v37 = vrot.slane %v1548_v33, %v2578_v45 }
 0x140   :  { %v1820_v57 = vcombine.low %v3128_v53, %v3142_v61 }
 0x141   :  { %863 = vrot.lane.b32.xlu0 %v791_v4, %s2443_s24  ;;  %855 = vrot.lane.b32.xlu1 %v790_v32, %s2441_s22  ;;  %v1572_v32 = vrot.slane %v1564_v42, %v2578_v45  ;;  %v1896_v42 = vrot.slane %v1888_v51, %v2578_v45 }
 0x143   :  { %v3153_v36 = vpop.permute.xlu1 %1802  ;;  %v3155_v13 = vpop.permute.xlu0 %1516  ;;  %v1581_v21 = vcombine.high %v1556_v37, %v1572_v32 }
 0x144   :  { %v1836_v4 = vcombine.low %v3140_v34, %v3153_v36 }
 0x145   :  { %563 = vrot.lane.b32.xlu0 %v451_v15, %s2443_s24  ;;  %555 = vrot.lane.b32.xlu1 %v450_v17, %s2441_s22  ;;  %v1649_v15 = vcombine.high %v1624_v48, %v1640_v62  ;;  %v452_v17 = vcombine.high %v3101_v49, %v2433_v2  ;;  %v1828_v62 = vrot.slane %v1820_v57, %v2578_v45 }
 0x146   :  { %v1844_v10 = vrot.slane %v1836_v4, %v2578_v45  ;;  %v1921_v49 = vcombine.high %v1896_v42, %v1912_v20 }
 0x147   :  { %v3169_v23 = vpop.permute.xlu1 %1522  ;;  %v3171_v26 = vpop.permute.xlu0 %1528  ;;  %v1663_v18 = vrot.slane %v1649_v15, %v2768_v52 }
 0x148   :  { %v1935_v57 = vrot.slane %v1921_v49, %v2768_v52 }
 0x149   :  { %835 = vrot.lane.b32.xlu0 %v723_v38, %s2443_s24  ;;  %827 = vrot.lane.b32.xlu1 %v722_v47, %s2441_s22  ;;  %v1580_v38 = vcombine.low %v1556_v37, %v1572_v32 }
 0x14b   :  { %v3187_v44 = vpop.permute.xlu1 %1534  ;;  %v3189_v35 = vpop.permute.xlu0 %1788 }
 0x14d   :  { %599 = vrot.lane.b32.xlu1 %v520_v31, %s2445_s26  ;;  %603 = vrot.lane.b32.xlu0 %v545_v46, %s2440_s21  ;;  %v3227_v31 = vrot.slane %v1648_v43, %v2768_v52  ;;  %v1852_v46 = vcombine.low %v1828_v62, %v1844_v10  ;;  %v1920_v43 = vcombine.low %v1896_v42, %v1912_v20 }
 0x14e   :  { %v1633_v20 = vcombine.high %v3050_v30, %v3067_v19  ;;  %v1853_v42 = vcombine.high %v1828_v62, %v1844_v10  ;;  %v1905_v19 = vcombine.high %v3084_v29, %v3094_v40  ;;  %v1565_v10 = vcombine.high %v3112_v12, %v3126_v50 }
 0x14f   :  { %v3207_v5 = vpop.permute.xlu1 %1794  ;;  %v3209_v1 = vpop.permute.xlu0 %1800  ;;  %v3253_v37 = vrot.slane %v1920_v43, %v2768_v52  ;;  %v1617_v43 = vcombine.high %v3036_v58, %v3052_v14  ;;  %v1331_v12 = vcombine.high %v2945_v6, %v2433_v2  ;;  %v1549_v50 = vcombine.high %v3096_v22, %v3114_v24 }
 0x150   :  { %v3269_v30 = vrot.slane %v1633_v20, %v2578_v45  ;;  %v1867_v62 = vrot.slane %v1853_v42, %v2768_v52  ;;  %v1837_v22 = vcombine.high %v3140_v34, %v3153_v36  ;;  %v1821_v34 = vcombine.high %v3128_v53, %v3142_v61 }
 0x151   :  { %871 = vrot.lane.b32.xlu0 %v792_v60, %s2445_s26  ;;  %875 = vrot.lane.b32.xlu1 %v817_v55, %s2440_s21  ;;  %v1680_v60 = vcombine.high %v3227_v31, %v2433_v2  ;;  %v3237_v55 = vrot.slane %v1580_v38, %v2768_v52 }
 0x153   :  { %v3224_v47 = vpop.permute.xlu1 %1806  ;;  %v289_v27 = vpop.permute.xlu0 %288  ;;  %v1612_v15 = vcombine.high %v3237_v55, %v2433_v2 }
 0x155   :  { %571 = vrot.lane.b32.xlu0 %v452_v17, %s2445_s26  ;;  %843 = vrot.lane.b32.xlu1 %v724_v41, %s2445_s26  ;;  %v3245_v17 = vrot.slane %v1852_v46, %v2768_v52 }
 0x157   :  { %v261_v48 = vpop.permute.xlu1 %260  ;;  %v285_v33 = vpop.permute.xlu0 %284  ;;  %3808 = vst [vmem:[#allocation4_spill] sm:$0xff] %v3245_v17  ;;  %v1884_v32 = vcombine.high %v3245_v17, %v2433_v2 }
 0x158   :  { %v329_v17 = vsel %vm315_vm3, %v2782_v54, %v285_v33  ;;  %v3279_v33 = vrot.slane %v1617_v43, %v2578_v45  ;;  %v1885_v43 = vcombine.high %v1867_v62, %v2433_v2 }
 0x159   :  { %1742 = vrot.lane.b32.xlu1 %v1663_v18, %s2439_s20  ;;  %1738 = vrot.lane.b32.xlu0 %v1680_v60, %s2440_s21  ;;  %v1595_v60 = vrot.slane %v1581_v21, %v2768_v52  ;;  %v1952_v21 = vcombine.high %v3253_v37, %v2433_v2  ;;  %v330_v58 = vsel %vm317_vm4, %v329_v17, %v289_v27 }
 0x15b   :  { %v257_v4 = vpop.permute.xlu1 %256  ;;  %v293_v51 = vpop.permute.xlu0 %292  ;;  %v1613_v17 = vcombine.high %v1595_v60, %v2433_v2 }
 0x15c   :  { %v316_v29 = vsel %vm315_vm3, %v2797_v56, %v257_v4  ;;  %v331_v40 = vsel %vm319_vm5, %v330_v58, %v293_v51  ;;  %v3296_v56 = vrot.slane %v1905_v19, %v2578_v45 }
 0x15d   :  { %2014 = vrot.lane.b32.xlu1 %v1935_v57, %s2439_s20  ;;  %1710 = vrot.lane.b32.xlu0 %v1612_v15, %s2440_s21  ;;  %v1681_v15 = vcombine.high %v1663_v18, %v2433_v2  ;;  %v1953_v18 = vcombine.high %v1935_v57, %v2433_v2  ;;  %v318_v24 = vsel %vm317_vm4, %v316_v29, %v261_v48 }
 0x15f   :  { %v265_v41 = vpop.permute.xlu1 %264  ;;  %v297_v38 = vpop.permute.xlu0 %296 }
 0x160   :  { %v332_v27 = vsel %vm321_vm6, %v331_v40, %v297_v38  ;;  %v320_v20 = vsel %vm319_vm5, %v318_v24, %v265_v41 }
 0x161   :  { %1714 = vrot.lane.b32.xlu1 %v1595_v60, %s2439_s20  ;;  %1982 = vrot.lane.b32.xlu0 %v1884_v32, %s2440_s21  ;;  %v1889_v32 = vcombine.high %v3069_v0, %v3086_v8  ;;  %v1664_v0 = vcombine.low %v3279_v33, %v3269_v30  ;;  %v3299_v8 = vrot.slane %v1565_v10, %v2578_v45 }
 0x162   :  { %v1835_v10 = vrot.slane %v1821_v34, %v2578_v45  ;;  %v1956_v34 = vcombine.low %v3189_v35, %v3209_v1 }
 0x163   :  { %v269_v49 = vpop.permute.xlu1 %268  ;;  %v301_v46 = vpop.permute.xlu0 %300  ;;  %v3308_v38 = vrot.slane %v1889_v32, %v2578_v45  ;;  %v1672_v60 = vrot.slane %v1664_v0, %v2768_v52  ;;  %v1692_v32 = vcombine.low %v3169_v23, %v3187_v44  ;;  %v1665_v0 = vcombine.high %v3279_v33, %v3269_v30 }
 0x164   :  { %v333_v6 = vsel %vm323_vm7, %v332_v27, %v301_v46  ;;  %v1563_v46 = vrot.slane %v1549_v50, %v2578_v45  ;;  %v322_v36 = vsel %vm321_vm6, %v320_v20, %v269_v49  ;;  %v1684_v27 = vcombine.low %v3155_v13, %v3171_v26 }
 0x165   :  { %2010 = vrot.lane.b32.xlu1 %v1952_v21, %s2440_s21  ;;  %1746 = vrot.lane.b32.xlu0 %v1681_v15, %s2441_s22  ;;  %v1936_v48 = vcombine.low %v3308_v38, %v3296_v56  ;;  %v3327_v15 = vrot.slane %v1837_v22, %v2578_v45  ;;  %v1699_v23 = vrot.slane %v1692_v32, %v2578_v45 }
 0x166   :  { %v1596_v21 = vcombine.low %v1563_v46, %v3299_v8  ;;  %v1937_v13 = vcombine.high %v3308_v38, %v3296_v56  ;;  %v1679_v26 = vrot.slane %v1665_v0, %v2768_v52  ;;  %v1597_v30 = vcombine.high %v1563_v46, %v3299_v8 }
 0x167   :  { %v273_v54 = vpop.permute.xlu1 %272  ;;  %v305_v14 = vpop.permute.xlu0 %304  ;;  %v1868_v58 = vcombine.low %v1835_v10, %v3327_v15  ;;  %v1869_v35 = vcombine.high %v1835_v10, %v3327_v15 }
 0x168   :  { %v334_v4 = vsel %vm325_vm8, %v333_v6, %v305_v14  ;;  %v324_v41 = vsel %vm323_vm7, %v322_v36, %v273_v54  ;;  %v1963_v36 = vrot.slane %v1956_v34, %v2578_v45 }
 0x169   :  { %1986 = vrot.lane.b32.xlu1 %v1867_v62, %s2439_s20  ;;  %2018 = vrot.lane.b32.xlu0 %v1953_v18, %s2441_s22  ;;  %v1944_v18 = vrot.slane %v1936_v48, %v2768_v52  ;;  %v1604_v62 = vrot.slane %v1596_v21, %v2768_v52  ;;  %v1876_v50 = vrot.slane %v1868_v58, %v2768_v52 }
 0x16a   :  { %v1883_v15 = vrot.slane %v1869_v35, %v2768_v52 }
 0x16b   :  { %v277_v51 = vpop.permute.xlu1 %276  ;;  %v309_v57 = vpop.permute.xlu0 %308  ;;  %v1954_v22 = vcombine.high %v1944_v18, %v2433_v2  ;;  %v1614_v24 = vcombine.high %v1604_v62, %v2433_v2  ;;  %v1886_v20 = vcombine.high %v1876_v50, %v2433_v2 }
 0x16c   :  { %v3312_v42 = vsel %vm327_vm9, %v334_v4, %v309_v57  ;;  %v326_v53 = vsel %vm325_vm8, %v324_v41, %v277_v51  ;;  %v1691_v4 = vrot.slane %v1684_v27, %v2578_v45  ;;  %v1964_v51 = vcombine.low %v3207_v5, %v3224_v47 }
 0x16d   :  { %894 = vst [vmem:[#allocation3 + $0x8] sm:$0xf] %v3312_v42  ;;  %1450 = vrot.lane.b32.xlu1 %v1331_v12, %s2445_s26  ;;  %1718 = vrot.lane.b32.xlu0 %v1613_v17, %s2441_s22  ;;  %v1682_v12 = vcombine.high %v1672_v60, %v2433_v2  ;;  %v1951_v5 = vrot.slane %v1937_v13, %v2768_v52 }
 0x16e   :  { %v1700_v33 = vcombine.low %v1691_v4, %v1699_v23  ;;  %v1971_v8 = vrot.slane %v1964_v51, %v2578_v45  ;;  %v1611_v47 = vrot.slane %v1597_v30, %v2768_v52 }
 0x16f   :  { %v3330_v61 = vpop.permute.xlu1 %312  ;;  %v281_v49 = vpop.permute.xlu0 %280 }
 0x170   :  { %v3334_v19 = vsel %vm327_vm9, %v326_v53, %v281_v49  ;;  %v3387_v56 = vrot.slane %v1700_v33, %v2768_v52  ;;  %v1972_v1 = vcombine.low %v1963_v36, %v1971_v8  ;;  %v336_v27 = vsel %vm315_vm3, %v2848_v63, %v3330_v61 }
 0x171   :  { %893 = vst [vmem:[#allocation3] sm:$0xf] %v3334_v19  ;;  %1750 = vrot.lane.b32.xlu1 %v1672_v60, %s2442_s23  ;;  %1990 = vrot.lane.b32.xlu0 %v1885_v43, %s2441_s22  ;;  %v1683_v60 = vcombine.high %v1679_v26, %v2433_v2  ;;  %v1955_v43 = vcombine.high %v1951_v5, %v2433_v2  ;;  %v910_v0 = vrot.slane %v336_v27, 4  ;;  %v908_v23 = vrot.slane %v3334_v19, 4 }
 0x172   :  { %v1708_v21 = vcombine.high %v3387_v56, %v2433_v2  ;;  %v3406_v45 = vrot.slane %v1972_v1, %v2768_v52  ;;  %v909_v52 = vrot.slane %v3312_v42, 4 }
 0x173   :  { %v3341_v54 = vpop.permute.xlu1 %1454  ;;  %v3343_v14 = vpop.permute.xlu0 %1426 }
 0x174   :  { %v1492_v4 = vsel %vm315_vm3, %v2863_v3, %v3341_v54 }
 0x175   :  { %2022 = vrot.lane.b32.xlu1 %v1944_v18, %s2442_s23  ;;  %1722 = vrot.lane.b32.xlu0 %v1604_v62, %s2442_s23  ;;  %v1615_v18 = vcombine.high %v1611_v47, %v2433_v2  ;;  %v1980_v62 = vcombine.high %v3406_v45, %v2433_v2 }
 0x177   :  { %v3351_v29 = vpop.permute.xlu1 %1458  ;;  %v3353_v40 = vpop.permute.xlu0 %1430 }
 0x178   :  { %v1493_v63 = vsel %vm317_vm4, %v1492_v4, %v3351_v29 }
 0x179   :  { %1754 = vrot.lane.b32.xlu1 %v1682_v12, %s2443_s24  ;;  %1994 = vrot.lane.b32.xlu0 %v1876_v50, %s2442_s23  ;;  %v1887_v50 = vcombine.high %v1883_v15, %v2433_v2 }
 0x17b   :  { %v3364_v44 = vpop.permute.xlu1 %1462  ;;  %v3366_v6 = vpop.permute.xlu0 %1434 }
 0x17d   :  { %2026 = vrot.lane.b32.xlu1 %v1954_v22, %s2443_s24  ;;  %1726 = vrot.lane.b32.xlu0 %v1614_v24, %s2443_s24 }
 0x17f   :  { %v1467_v57 = vpop.permute.xlu1 %1466  ;;  %v3379_v17 = vpop.permute.xlu0 %1438 }
 0x181   :  { %1758 = vrot.lane.b32.xlu1 %v1679_v26, %s2444_s25  ;;  %1998 = vrot.lane.b32.xlu0 %v1886_v20, %s2443_s24  ;;  %v1494_v26 = vsel %vm319_vm5, %v1493_v63, %v3364_v44 }
 0x182   :  { %v1495_v33 = vsel %vm321_vm6, %v1494_v26, %v1467_v57 }
 0x183   :  { %v1471_v38 = vpop.permute.xlu1 %1470  ;;  %v3390_v46 = vpop.permute.xlu0 %1442 }
 0x184   :  { %v1496_v3 = vsel %vm323_vm7, %v1495_v33, %v1471_v38 }
 0x185   :  { %2030 = vrot.lane.b32.xlu1 %v1951_v5, %s2444_s25  ;;  %1730 = vrot.lane.b32.xlu0 %v1611_v47, %s2444_s25 }
 0x187   :  { %v1475_v48 = vpop.permute.xlu1 %1474  ;;  %v3398_v41 = vpop.permute.xlu0 %1446 }
 0x188   :  { %v1497_v54 = vsel %vm325_vm8, %v1496_v3, %v1475_v48 }
 0x189   :  { %1762 = vrot.lane.b32.xlu1 %v1683_v60, %s2445_s26  ;;  %1766 = vrot.lane.b32.xlu0 %v1708_v21, %s2440_s21 }
 0x18b   :  { %v1479_v53 = vpop.permute.xlu1 %1478  ;;  %v1483_v49 = vpop.permute.xlu0 %1482 }
 0x18c   :  { %v1499_v30 = vsel %vm315_vm3, %v2948_v7, %v1483_v49  ;;  %v3447_v34 = vsel %vm327_vm9, %v1497_v54, %v1479_v53 }
 0x18d   :  { %2002 = vrot.lane.b32.xlu1 %v1883_v15, %s2444_s25  ;;  %2034 = vrot.lane.b32.xlu0 %v1955_v43, %s2445_s26  ;;  %v2073_v29 = vrot.slane %v1499_v30, 4  ;;  %v2072_v7 = vrot.slane %v3447_v34, 4 }
 0x18f   :  { %v3412_v10 = vpop.permute.xlu1 %559  ;;  %v580_v58 = vpop.permute.xlu0 %579 }
 0x191   :  { %1734 = vrot.lane.b32.xlu0 %v1615_v18, %s2445_s26  ;;  %2038 = vrot.lane.b32.xlu1 %v1980_v62, %s2440_s21 }
 0x193   :  { %v3420_v32 = vpop.permute.xlu1 %831  ;;  %v852_v12 = vpop.permute.xlu0 %851 }
 0x195   :  { %2006 = vrot.lane.b32.xlu1 %v1887_v50, %s2445_s26  ;;  %913 = vrot.lane.b32.xlu0 %v909_v52, %s2445_s26 }
 0x197   :  { %v596_v22 = vpop.permute.xlu1 %595  ;;  %v552_v24 = vpop.permute.xlu0 %551 }
 0x199   :  { %915 = vrot.lane.b32.xlu1 %v910_v0, %s2445_s26  ;;  %911 = vrot.lane.b32.xlu0 %v908_v23, %s2445_s26 }
 0x19b   :  { %v868_v61 = vpop.permute.xlu1 %867  ;;  %v824_v13 = vpop.permute.xlu0 %823 }
 0x19d   :  { %956 = vrot.lane.b32.xlu1 %v3312_v42, %s2444_s25  ;;  %958 = vrot.lane.b32.xlu0 %v336_v27, %s2444_s25 }
 0x19f   :  { %v840_v51 = vpop.permute.xlu1 %839  ;;  %v588_v20 = vpop.permute.xlu0 %587 }
 0x1a1   :  { %954 = vrot.lane.b32.xlu1 %v3334_v19, %s2444_s25  ;;  %2078 = vrot.lane.b32.xlu0 %v2073_v29, %s2445_s26 }
 0x1a3   :  { %v576_v42 = vpop.permute.xlu1 %575  ;;  %v860_v44 = vpop.permute.xlu0 %859 }
 0x1a4   :  { %v613_v35 = vsel %vm315_vm3, %v3065_v59, %v576_v42 }
 0x1a5   :  { %2076 = vrot.lane.b32.xlu1 %v2072_v7, %s2445_s26  ;;  %2121 = vrot.lane.b32.xlu0 %v1499_v30, %s2444_s25  ;;  %v614_v48 = vsel %vm317_vm4, %v613_v35, %v580_v58 }
 0x1a7   :  { %v548_v57 = vpop.permute.xlu1 %547  ;;  %v568_v8 = vpop.permute.xlu0 %567 }
 0x1a8   :  { %v606_v18 = vsel %vm315_vm3, %v3090_v25, %v548_v57 }
 0x1a9   :  { %v607_v27 = vsel %vm317_vm4, %v606_v18, %v552_v24 }
 0x1ab   :  { %v820_v38 = vpop.permute.xlu1 %819  ;;  %v848_v5 = vpop.permute.xlu0 %847 }
 0x1ac   :  { %v885_v60 = vsel %vm315_vm3, %v3104_v28, %v848_v5  ;;  %v878_v59 = vsel %vm315_vm3, %v3107_v39, %v820_v38 }
 0x1ad   :  { %v886_v43 = vsel %vm317_vm4, %v885_v60, %v852_v12  ;;  %v879_v0 = vsel %vm317_vm4, %v878_v59, %v824_v13 }
 0x1af   :  { %v584_v47 = vpop.permute.xlu1 %583  ;;  %v592_v36 = vpop.permute.xlu0 %591 }
 0x1b0   :  { %v615_v21 = vsel %vm319_vm5, %v614_v48, %v584_v47 }
 0x1b1   :  { %v616_v15 = vsel %vm321_vm6, %v615_v21, %v588_v20 }
 0x1b2   :  { %v617_v28 = vsel %vm323_vm7, %v616_v15, %v592_v36 }
 0x1b3   :  { %v856_v19 = vpop.permute.xlu1 %855  ;;  %v864_v1 = vpop.permute.xlu0 %863  ;;  %v618_v4 = vsel %vm325_vm8, %v617_v28, %v596_v22 }
 0x1b4   :  { %v887_v62 = vsel %vm319_vm5, %v886_v43, %v856_v19 }
 0x1b5   :  { %v888_v50 = vsel %vm321_vm6, %v887_v62, %v860_v44 }
 0x1b6   :  { %v889_v63 = vsel %vm323_vm7, %v888_v50, %v864_v1 }
 0x1b7   :  { %v556_v53 = vpop.permute.xlu1 %555  ;;  %v564_v49 = vpop.permute.xlu0 %563  ;;  %v890_v3 = vsel %vm325_vm8, %v889_v63, %v868_v61 }
 0x1b8   :  { %v608_v12 = vsel %vm319_vm5, %v607_v27, %v556_v53  ;;  %v1485_v53 = vsel %vm315_vm3, %v2866_v11, %v3343_v14 }
 0x1b9   :  { %v609_v24 = vsel %vm321_vm6, %v608_v12, %v3412_v10 }
 0x1ba   :  { %v610_v29 = vsel %vm323_vm7, %v609_v24, %v564_v49  ;;  %v1486_v49 = vsel %vm317_vm4, %v1485_v53, %v3353_v40 }
 0x1bb   :  { %v828_v58 = vpop.permute.xlu1 %827  ;;  %v836_v52 = vpop.permute.xlu0 %835  ;;  %v611_v61 = vsel %vm325_vm8, %v610_v29, %v568_v8  ;;  %v1487_v18 = vsel %vm319_vm5, %v1486_v49, %v3366_v6 }
 0x1bc   :  { %v880_v23 = vsel %vm319_vm5, %v879_v0, %v828_v58  ;;  %v1488_v59 = vsel %vm321_vm6, %v1487_v18, %v3379_v17 }
 0x1bd   :  { %v881_v13 = vsel %vm321_vm6, %v880_v23, %v3420_v32  ;;  %v1489_v62 = vsel %vm323_vm7, %v1488_v59, %v3390_v46 }
 0x1be   :  { %v1490_v11 = vsel %vm325_vm8, %v1489_v62, %v3398_v41 }
 0x1bf   :  { %v600_v25 = vpop.permute.xlu1 %599  ;;  %v604_v39 = vpop.permute.xlu0 %603 }
 0x1c0   :  { %v3477_v26 = vsel %vm327_vm9, %v618_v4, %v600_v25  ;;  %v620_v30 = vsel %vm315_vm3, %v3163_v9, %v604_v39  ;;  %v882_v9 = vsel %vm323_vm7, %v881_v13, %v836_v52 }
 0x1c1   :  { %v898_v33 = vrot.slane %v3477_v26, 4  ;;  %928 = vrot.lane.b32.xlu0 %v620_v30, %s2445_s26  ;;  %v883_v42 = vsel %vm325_vm8, %v882_v9, %v840_v51  ;;  %v966_v5 = vrot.slane %v620_v30, 4 }
 0x1c3   :  { %902 = vst [vmem:[#allocation3 + $0x8] sm:$0xf0] %v898_v33  ;;  %v876_v22 = vpop.permute.xlu1 %875  ;;  %v872_v54 = vpop.permute.xlu0 %871 }
 0x1c4   :  { %v892_v10 = vsel %vm315_vm3, %v3180_v16, %v876_v22  ;;  %v3495_v32 = vsel %vm327_vm9, %v890_v3, %v872_v54 }
 0x1c5   :  { %v941_v20 = vrot.slane %v892_v10, 4  ;;  %904 = vst [vmem:[#allocation3 + $0x18] sm:$0xf] %v3495_v32  ;;  %v940_v24 = vrot.slane %v3495_v32, 4 }
 0x1c7   :  { %v844_v7 = vpop.permute.xlu1 %843  ;;  %946 = vrot.lane.b32.xlu0 %v941_v20, %s2445_s26  ;;  %v572_v44 = vpop.permute.xlu0 %571 }
 0x1c8   :  { %v884_v57 = vsel %vm327_vm9, %v883_v42, %v844_v7  ;;  %v612_v38 = vsel %vm327_vm9, %v611_v61, %v572_v44 }
 0x1c9   :  { %903 = vst [vmem:[#allocation3 + $0x10] sm:$0xf] %v884_v57  ;;  %v897_v16 = vrot.slane %v612_v38, 4  ;;  %v939_v48 = vrot.slane %v884_v57, 4 }
 0x1ca   :  { %v3503_v47 = vld [vmem:[#allocation3 + $0x8] sm:$0xff] }
 0x1cb   :  { %901 = vst [vmem:[#allocation3] sm:$0xf0] %v897_v16  ;;  %v1743_v36 = vpop.permute.xlu1 %1742  ;;  %971 = vrot.lane.b32.xlu0 %v966_v5, %s2444_s25  ;;  %v1739_v35 = vpop.permute.xlu0 %1738  ;;  %2057 = vst [vmem:[#allocation3 + $0x8] sm:$0xf] %v3447_v34 }
 0x1cc   :  { %v1776_v4 = vsel %vm315_vm3, %v3227_v31, %v1739_v35 }
 0x1cd   :  { %v1777_v39 = vsel %vm317_vm4, %v1776_v4, %v1743_v36 }
 0x1cf   :  { %v3507_v51 = vpop.permute.xlu1 %2014  ;;  %981 = vrot.lane.b32.xlu0 %v3495_v32, %s2444_s25  ;;  %v1711_v8 = vpop.permute.xlu0 %1710 }
 0x1d0   :  { %v1769_v32 = vsel %vm315_vm3, %v3237_v55, %v1711_v8 }
 0x1d2   :  { %v3532_v52 = vld [vmem:[#allocation3] sm:$0xff] }
 0x1d3   :  { %v1715_v19 = vpop.permute.xlu1 %1714  ;;  %979 = vrot.lane.b32.xlu0 %v884_v57, %s2444_s25  ;;  %v3512_v1 = vpop.permute.xlu0 %1982 }
 0x1d4   :  { %v1770_v7 = vsel %vm317_vm4, %v1769_v32, %v1715_v19 }
 0x1d7   :  { %v2011_v60 = vpop.permute.xlu1 %2010  ;;  %942 = vrot.lane.b32.xlu0 %v939_v48, %s2445_s26  ;;  %v1747_v21 = vpop.permute.xlu0 %1746 }
 0x1d8   :  { %v1778_v30 = vsel %vm319_vm5, %v1777_v39, %v1747_v21  ;;  %v2048_v20 = vsel %vm315_vm3, %v3253_v37, %v2011_v60 }
 0x1d9   :  { %v2049_v44 = vsel %vm317_vm4, %v2048_v20, %v3507_v51 }
 0x1db   :  { %v3520_v15 = vpop.permute.xlu1 %1986  ;;  %967 = vrot.lane.b32.xlu0 %v897_v16, %s2444_s25  ;;  %v2019_v43 = vpop.permute.xlu0 %2018 }
 0x1dc   :  { %v2050_v55 = vsel %vm319_vm5, %v2049_v44, %v2019_v43 }
 0x1df   :  { %v1451_v14 = vpop.permute.xlu1 %1450  ;;  %v1719_v58 = vpop.permute.xlu0 %1718 }
 0x1e0   :  { %v1491_v40 = vsel %vm327_vm9, %v1490_v11, %v1451_v14 }
 0x1e1   :  { %v2071_v28 = vrot.slane %v1491_v40, 4  ;;  %2056 = vst [vmem:[#allocation3] sm:$0xf] %v1491_v40 }
 0x1e3   :  { %v1751_v50 = vpop.permute.xlu1 %1750  ;;  %2074 = vrot.lane.b32.xlu1 %v2071_v28, %s2445_s26  ;;  %v1991_v6 = vpop.permute.xlu0 %1990 }
 0x1e4   :  { %v1779_v13 = vsel %vm321_vm6, %v1778_v30, %v1751_v50 }
 0x1e7   :  { %v2023_v27 = vpop.permute.xlu1 %2022  ;;  %2119 = vrot.lane.b32.xlu1 %v3447_v34, %s2444_s25  ;;  %v1723_v17 = vpop.permute.xlu0 %1722 }
 0x1eb   :  { %v1755_v46 = vpop.permute.xlu1 %1754  ;;  %2117 = vrot.lane.b32.xlu1 %v1491_v40, %s2444_s25  ;;  %v1995_v41 = vpop.permute.xlu0 %1994 }
 0x1ec   :  { %v1780_v22 = vsel %vm323_vm7, %v1779_v13, %v1755_v46 }
 0x1ef   :  { %v2027_v0 = vpop.permute.xlu1 %2026  ;;  %983 = vrot.lane.b32.xlu1 %v892_v10, %s2444_s25  ;;  %v1727_v12 = vpop.permute.xlu0 %1726 }
 0x1f3   :  { %v1759_v23 = vpop.permute.xlu1 %1758  ;;  %926 = vrot.lane.b32.xlu1 %v3477_v26, %s2445_s26  ;;  %v1999_v25 = vpop.permute.xlu0 %1998 }
 0x1f4   :  { %v1781_v3 = vsel %vm325_vm8, %v1780_v22, %v1759_v23 }
 0x1f7   :  { %v2031_v34 = vpop.permute.xlu1 %2030  ;;  %924 = vrot.lane.b32.xlu1 %v612_v38, %s2445_s26  ;;  %v1731_v63 = vpop.permute.xlu0 %1730  ;;  %v2051_v38 = vsel %vm321_vm6, %v2050_v55, %v2023_v27 }
 0x1f8   :  { %v2052_v35 = vsel %vm323_vm7, %v2051_v38, %v2027_v0 }
 0x1f9   :  { %v2053_v48 = vsel %vm325_vm8, %v2052_v35, %v2031_v34 }
 0x1fb   :  { %v1763_v54 = vpop.permute.xlu1 %1762  ;;  %944 = vrot.lane.b32.xlu1 %v940_v24, %s2445_s26  ;;  %v1767_v31 = vpop.permute.xlu0 %1766 }
 0x1fc   :  { %v1782_v29 = vsel %vm327_vm9, %v1781_v3, %v1763_v54  ;;  %v1783_v9 = vsel %vm315_vm3, %v3387_v56, %v1767_v31  ;;  %v1771_v56 = vsel %vm319_vm5, %v1770_v7, %v1719_v58 }
 0x1fd   :  { %v2061_v10 = vrot.slane %v1782_v29, 4  ;;  %2091 = vrot.lane.b32.xlu0 %v1783_v9, %s2445_s26  ;;  %v1772_v57 = vsel %vm321_vm6, %v1771_v56, %v1723_v17 }
 0x1fe   :  { %v1773_v37 = vsel %vm323_vm7, %v1772_v57, %v1727_v12 }
 0x1ff   :  { %v2003_v42 = vpop.permute.xlu1 %2002  ;;  %969 = vrot.lane.b32.xlu1 %v898_v33, %s2444_s25  ;;  %v2035_v61 = vpop.permute.xlu0 %2034  ;;  %2065 = vst [vmem:[#allocation3 + $0x8] sm:$0xf0] %v2061_v10  ;;  %v1774_v5 = vsel %vm325_vm8, %v1773_v37, %v1731_v63  ;;  %v3809_v33 = vld [vmem:[#allocation4_spill] sm:$0xff] }
 0x200   :  { %v2041_v36 = vsel %vm315_vm3, %v3809_v33, %v3512_v1  ;;  %v2054_v49 = vsel %vm327_vm9, %v2053_v48, %v2035_v61 }
 0x201   :  { %v2042_v19 = vsel %vm317_vm4, %v2041_v36, %v3520_v15  ;;  %v2129_v15 = vrot.slane %v1783_v9, 4  ;;  %v2103_v62 = vrot.slane %v2054_v49, 4 }
 0x202   :  { %v2043_v53 = vsel %vm319_vm5, %v2042_v19, %v1991_v6 }
 0x203   :  { %v2039_v16 = vpop.permute.xlu1 %2038  ;;  %2089 = vrot.lane.b32.xlu1 %v1782_v29, %s2445_s26  ;;  %v1735_v26 = vpop.permute.xlu0 %1734  ;;  %v2044_v1 = vsel %vm321_vm6, %v2043_v53, %v1995_v41 }
 0x204   :  { %v2055_v51 = vsel %vm315_vm3, %v3406_v45, %v2039_v16  ;;  %v1775_v8 = vsel %vm327_vm9, %v1774_v5, %v1735_v26  ;;  %v2045_v18 = vsel %vm323_vm7, %v2044_v1, %v1999_v25 }
 0x205   :  { %v2104_v60 = vrot.slane %v2055_v51, 4  ;;  %v2060_v21 = vrot.slane %v1775_v8, 4  ;;  %v2046_v59 = vsel %vm325_vm8, %v2045_v18, %v2003_v42 }
 0x206   :  { %v2155_v63 = vld [vmem:[#allocation3 + $0x8] sm:$0xff] }
 0x207   :  { %v2007_v43 = vpop.permute.xlu1 %2006  ;;  %2109 = vrot.lane.b32.xlu0 %v2104_v60, %s2445_s26  ;;  %2087 = vrot.lane.b32.xlu1 %v1775_v8, %s2445_s26  ;;  %v914_v45 = vpop.permute.xlu0 %913  ;;  %2064 = vst [vmem:[#allocation3] sm:$0xf0] %v2060_v21 }
 0x208   :  { %v2047_v11 = vsel %vm327_vm9, %v2046_v59, %v2007_v43 }
 0x209   :  { %v2102_v50 = vrot.slane %v2047_v11, 4 }
 0x20b   :  { %v916_v14 = vpop.permute.xlu1 %915  ;;  %2134 = vrot.lane.b32.xlu0 %v2129_v15, %s2444_s25  ;;  %2107 = vrot.lane.b32.xlu1 %v2103_v62, %s2445_s26  ;;  %v912_v58 = vpop.permute.xlu0 %911 }
 0x20c   :  { %v918_v40 = vsel %vm327_vm9, %v914_v45, %v916_v14  ;;  %v917_v28 = vsel %vm327_vm9, %v912_v58, %v914_v45 }
 0x20d   :  { %922 = vst [vmem:[#allocation3 + $0x18] sm:$0xf0] %v918_v40  ;;  %921 = vst [vmem:[#allocation3 + $0x10] sm:$0xf0] %v917_v28  ;;  %v28_v28 = vld [vmem:[%s3804_s1] sm:$0xff] }
 0x20e   :  { %v2154_v20 = vld [vmem:[#allocation3] sm:$0xff] }
 0x20f   :  { %v957_v6 = vpop.permute.xlu1 %956  ;;  %2105 = vrot.lane.b32.xlu0 %v2102_v50, %s2445_s26  ;;  %2132 = vrot.lane.b32.xlu1 %v2061_v10, %s2444_s25  ;;  %v959_v27 = vpop.permute.xlu0 %958 }
 0x210   :  { %v961_v17 = vsel %vm325_vm8, %v957_v6, %v959_v27 }
 0x211   :  { %965 = vst [vmem:[#allocation3 + $0x38] sm:$0xf] %v961_v17 }
 0x213   :  { %v955_v46 = vpop.permute.xlu1 %954  ;;  %2144 = vrot.lane.b32.xlu1 %v2054_v49, %s2444_s25  ;;  %2130 = vrot.lane.b32.xlu0 %v2060_v21, %s2444_s25  ;;  %v2079_v4 = vpop.permute.xlu0 %2078 }
 0x214   :  { %v960_v41 = vsel %vm325_vm8, %v955_v46, %v957_v6  ;;  %v994_v0 = vld [vmem:[#allocation3 + $0x18] sm:$0xff]  ;;  %v993_v12 = vld [vmem:[#allocation3 + $0x10] sm:$0xff] }
 0x215   :  { %964 = vst [vmem:[#allocation3 + $0x30] sm:$0xf] %v960_v41  ;;  %v2385_v23 = vpack.c.bf16 %v994_v0, %v3503_v47  ;;  %2067 = vst [vmem:[#allocation3 + $0x18] sm:$0xf] %v2054_v49  ;;  %v2387_v25 = vpack.c.bf16 %v993_v12, %v3532_v52  ;;  %v29_v41 = vld [vmem:[%s3804_s1 + $0x8] sm:$0xff] }
 0x216   :  { %2066 = vst [vmem:[#allocation3 + $0x10] sm:$0xf] %v2047_v11 }
 0x217   :  { %v2077_v39 = vpop.permute.xlu1 %2076  ;;  %2142 = vrot.lane.b32.xlu1 %v2047_v11, %s2444_s25  ;;  %2146 = vrot.lane.b32.xlu0 %v2055_v51, %s2444_s25  ;;  %v2122_v47 = vpop.permute.xlu0 %2121 }
 0x218   :  { %v2081_v34 = vsel %vm327_vm9, %v2077_v39, %v2079_v4  ;;  %2386 = vmatprep.subr.bf16.mxu0 %v2385_v23 }
 0x219   :  { %2085 = vst [vmem:[#allocation3 + $0x18] sm:$0xf0] %v2081_v34  ;;  %2388 = vmatpush1.bf16.msra.mxu0 %v2387_v25  ;;  %v30_v25 = vld [vmem:[%s3804_s1 + $0x10] sm:$0xff] }
 0x220   :  { %v2157_v30 = vld [vmem:[#allocation3 + $0x18] sm:$0xff] }
 0x221   :  { %v2393_v24 = vpack.c.bf16 %v2157_v30, %v2155_v63 }
 0x223   :  { %2394 = vmatprep.subr.bf16.mxu1 %v2393_v24 }
 0x233   :  { %v929_v13 = vpop.permute.xlu0 %928 }
 0x239   :  { %v947_v22 = vpop.permute.xlu0 %946 }
 0x23d   :  { %v972_v52 = vpop.permute.xlu0 %971 }
 0x241   :  { %v982_v3 = vpop.permute.xlu0 %981 }
 0x245   :  { %v980_v54 = vpop.permute.xlu0 %979 }
 0x246   :  { %v985_v31 = vsel %vm325_vm8, %v980_v54, %v982_v3 }
 0x247   :  { %989 = vst [vmem:[#allocation3 + $0x40] sm:$0xf] %v985_v31 }
 0x249   :  { %v943_v38 = vpop.permute.xlu0 %942 }
 0x24d   :  { %v968_v33 = vpop.permute.xlu0 %967 }
 0x24e   :  { %v999_v27 = vld [vmem:[#allocation3 + $0x40] sm:$0xf] }
 0x255   :  { %v2075_v29 = vpop.permute.xlu1 %2074 }
 0x256   :  { %v2080_v9 = vsel %vm327_vm9, %v2075_v29, %v2077_v39 }
 0x257   :  { %2084 = vst [vmem:[#allocation3 + $0x10] sm:$0xf0] %v2080_v9 }
 0x259   :  { %v2120_v10 = vpop.permute.xlu1 %2119 }
 0x25a   :  { %v2124_v49 = vsel %vm325_vm8, %v2120_v10, %v2122_v47 }
 0x25d   :  { %v2118_v32 = vpop.permute.xlu1 %2117 }
 0x25e   :  { %v2156_v7 = vld [vmem:[#allocation3 + $0x10] sm:$0xff]  ;;  %v2123_v1 = vsel %vm325_vm8, %v2118_v32, %v2120_v10 }
 0x25f   :  { %v2395_v42 = vpack.c.bf16 %v2156_v7, %v2154_v20 }
 0x261   :  { %v984_v61 = vpop.permute.xlu1 %983  ;;  %2396 = vmatpush1.bf16.msra.mxu1 %v2395_v42 }
 0x262   :  { %v986_v56 = vsel %vm325_vm8, %v982_v3, %v984_v61 }
 0x263   :  { %990 = vst [vmem:[#allocation3 + $0x48] sm:$0xf] %v986_v56 }
 0x265   :  { %v927_v44 = vpop.permute.xlu1 %926 }
 0x266   :  { %v931_v57 = vsel %vm327_vm9, %v927_v44, %v929_v13  ;;  %v31_v13 = vld [vmem:[%s3804_s1 + $0x18] sm:$0xff] }
 0x267   :  { %935 = vst [vmem:[#allocation3 + $0x28] sm:$0xf] %v931_v57 }
 0x269   :  { %v925_v55 = vpop.permute.xlu1 %924 }
 0x26a   :  { %v930_v37 = vsel %vm327_vm9, %v925_v55, %v927_v44  ;;  %v1000_v40 = vld [vmem:[#allocation3 + $0x48] sm:$0xf] }
 0x26b   :  { %934 = vst [vmem:[#allocation3 + $0x20] sm:$0xf] %v930_v37 }
 0x26d   :  { %v945_v5 = vpop.permute.xlu1 %944 }
 0x26e   :  { %v948_v16 = vsel %vm327_vm9, %v943_v38, %v945_v5  ;;  %v949_v26 = vsel %vm327_vm9, %v945_v5, %v947_v22 }
 0x26f   :  { %952 = vst [vmem:[#allocation3 + $0x20] sm:$0xf0] %v948_v16  ;;  %953 = vst [vmem:[#allocation3 + $0x28] sm:$0xf0] %v949_v26  ;;  %v2092_v8 = vpop.permute.xlu0 %2091 }
 0x271   :  { %v970_v36 = vpop.permute.xlu1 %969 }
 0x272   :  { %v973_v35 = vsel %vm325_vm8, %v968_v33, %v970_v36  ;;  %v974_v51 = vsel %vm325_vm8, %v970_v36, %v972_v52 }
 0x273   :  { %977 = vst [vmem:[#allocation3 + $0x30] sm:$0xf0] %v973_v35  ;;  %978 = vst [vmem:[#allocation3 + $0x38] sm:$0xf0] %v974_v51 }
 0x275   :  { %v2090_v19 = vpop.permute.xlu1 %2089 }
 0x276   :  { %v996_v48 = vld [vmem:[#allocation3 + $0x28] sm:$0xff]  ;;  %v2094_v60 = vsel %vm327_vm9, %v2090_v19, %v2092_v8  ;;  %v995_v43 = vld [vmem:[#allocation3 + $0x20] sm:$0xff] }
 0x277   :  { %2098 = vst [vmem:[#allocation3 + $0x28] sm:$0xf] %v2094_v60 }
 0x279   :  { %v2088_v21 = vpop.permute.xlu1 %2087  ;;  %v2110_v53 = vpop.permute.xlu0 %2109 }
 0x27a   :  { %v2093_v45 = vsel %vm327_vm9, %v2088_v21, %v2090_v19  ;;  %v998_v18 = vld [vmem:[#allocation3 + $0x38] sm:$0xff]  ;;  %v997_v15 = vld [vmem:[#allocation3 + $0x30] sm:$0xff] }
 0x27b   :  { %2097 = vst [vmem:[#allocation3 + $0x20] sm:$0xf] %v2093_v45  ;;  %v2389_v59 = vpack.c.bf16 %v998_v18, %v996_v48  ;;  %2128 = vst [vmem:[#allocation3 + $0x38] sm:$0xf] %v2124_v49  ;;  %v2391_v62 = vpack.c.bf16 %v997_v15, %v995_v43 }
 0x27c   :  { %2127 = vst [vmem:[#allocation3 + $0x30] sm:$0xf] %v2123_v1 }
 0x27d   :  { %v2108_v11 = vpop.permute.xlu1 %2107  ;;  %2390 = vmatprep.subr.bf16.mxu0 %v2389_v59  ;;  %v2135_v14 = vpop.permute.xlu0 %2134 }
 0x27e   :  { %v2112_v58 = vsel %vm327_vm9, %v2108_v11, %v2110_v53  ;;  %2392 = vmatpush1.bf16.msra.mxu0 %v2391_v62 }
 0x27f   :  { %2116 = vst [vmem:[#allocation3 + $0x28] sm:$0xf0] %v2112_v58  ;;  %2357 = vmatprep.subr.msk.mxu0 %vm1014_vm10, %v1000_v40 }
 0x281   :  { %v2133_v50 = vpop.permute.xlu1 %2132  ;;  %v2106_v6 = vpop.permute.xlu0 %2105 }
 0x282   :  { %v2137_v17 = vsel %vm325_vm8, %v2133_v50, %v2135_v14  ;;  %v2111_v46 = vsel %vm327_vm9, %v2106_v6, %v2108_v11  ;;  %2358 = vmatpush1.msk.msra.mxu0 %vm1014_vm10, %v999_v27 }
 0x283   :  { %2141 = vst [vmem:[#allocation3 + $0x38] sm:$0xf0] %v2137_v17  ;;  %2115 = vst [vmem:[#allocation3 + $0x20] sm:$0xf0] %v2111_v46  ;;  %2359 = vmatmul.mubr.msk.f32.vlgmr.msra.gmra.mrb[0].mxu0 %vm1001_vm11, %v28_v28 }
 0x284   :  { %1091 = vmatprep.mubr.f32.mxu0 %v2433_v2 }
 0x285   :  { %v2145_v0 = vpop.permute.xlu1 %2144  ;;  %v2131_v12 = vpop.permute.xlu0 %2130 }
 0x286   :  { %v2136_v23 = vsel %vm325_vm8, %v2131_v12, %v2133_v50  ;;  %v2159_v30 = vld [vmem:[#allocation3 + $0x28] sm:$0xff]  ;;  %v2446_v12 = vmov 0  }
 0x287   :  { %2140 = vst [vmem:[#allocation3 + $0x30] sm:$0xf0] %v2136_v23  ;;  %2360 = vmatmul.mubr.msk.f32.gmra.mrb[2].mxu0 %vm1001_vm11, %v29_v41  ;;  %2416 = vset.pattern.permute.xlu1 %v2446_v12 }
 0x288   :  { %1097 = vmatprep.mubr.f32.mxu0 %v2433_v2 }
 0x289   :  { %v2143_v4 = vpop.permute.xlu1 %2142  ;;  %v2147_v39 = vpop.permute.xlu0 %2146 }
 0x28a   :  { %v2148_v34 = vsel %vm325_vm8, %v2143_v4, %v2145_v0  ;;  %v2149_v63 = vsel %vm325_vm8, %v2145_v0, %v2147_v39  ;;  %v2161_v24 = vld [vmem:[#allocation3 + $0x38] sm:$0xff]  ;;  %v2158_v22 = vld [vmem:[#allocation3 + $0x20] sm:$0xff] }
 0x28b   :  { %2152 = vst [vmem:[#allocation3 + $0x40] sm:$0xf] %v2148_v34  ;;  %2153 = vst [vmem:[#allocation3 + $0x48] sm:$0xf] %v2149_v63  ;;  %v2397_v47 = vpack.c.bf16 %v2161_v24, %v2159_v30  ;;  %2361 = vmatmul.mubr.msk.f32.gmra.mrb[4].mxu0 %vm1001_vm11, %v30_v25 }
 0x28c   :  { %1103 = vmatprep.mubr.f32.mxu0 %v2433_v2 }
 0x28d   :  { %2398 = vmatprep.subr.bf16.mxu1 %v2397_v47 }
 0x28e   :  { %v2160_v52 = vld [vmem:[#allocation3 + $0x30] sm:$0xff] }
 0x28f   :  { %v2399_v3 = vpack.c.bf16 %v2160_v52, %v2158_v22  ;;  %2362 = vmatmul.mubr.msk.f32.gmra.mrb[6].mxu0 %vm1001_vm11, %v31_v13 }
 0x291   :  { %2400 = vmatpush1.bf16.msra.mxu1 %v2399_v3 }
 0x292   :  { %v2163_v54 = vld [vmem:[#allocation3 + $0x48] sm:$0xf]  ;;  %v2162_v31 = vld [vmem:[#allocation3 + $0x40] sm:$0xf] }
 0x293   :  { %2371 = vmatprep.subr.msk.mxu1 %vm1014_vm10, %v2163_v54 }
 0x295   :  { %2372 = vmatpush1.msk.msra.mxu1 %vm1014_vm10, %v2162_v31 }
 0x296   :  { %2373 = vmatmul.mubr.msk.f32.vlgmr.msra.gmra.mrb[0].mxu1 %vm1001_vm11, %v28_v28 }
 0x297   :  { %2240 = vmatprep.mubr.f32.mxu1 %v2433_v2 }
 0x29a   :  { %2374 = vmatmul.mubr.msk.f32.gmra.mrb[2].mxu1 %vm1001_vm11, %v29_v41 }
 0x29b   :  { %2246 = vmatprep.mubr.f32.mxu1 %v2433_v2 }
 0x29e   :  { %2375 = vmatmul.mubr.msk.f32.gmra.mrb[4].mxu1 %vm1001_vm11, %v30_v25 }
 0x29f   :  { %2252 = vmatprep.mubr.f32.mxu1 %v2433_v2 }
 0x2a2   :  { %2376 = vmatmul.mubr.msk.f32.gmra.mrb[6].mxu1 %vm1001_vm11, %v31_v13 }
 0x356   :  { %v3654_v29 = vpop.f32.mrb[0].mxu0 }
 0x357   :  { %v1125_v9 = vmul.f32 %v3654_v29, %v3654_v29  ;;  %v3658_v10 = vpop.f32.mrb[1].mxu0 }
 0x358   :  { %v1110_v32 = vadd.f32 %v3658_v10, %v3654_v29  ;;  %v1126_v20 = vmul.f32 %v3658_v10, %v3658_v10 }
 0x35a   :  { %v3664_v7 = vpop.f32.mrb[2].mxu0  ;;  %1111 = vadd.xlane.f32.xlu0 %v1110_v32  ;;  %v1133_v42 = vadd.f32 %v1126_v20, %v1125_v9 }
 0x35b   :  { %v1127_v2 = vmul.f32 %v3664_v7, %v3664_v7  ;;  %v3668_v61 = vpop.f32.mrb[3].mxu0 }
 0x35c   :  { %v1113_v56 = vadd.f32 %v3668_v61, %v3664_v7  ;;  %v1128_v44 = vmul.f32 %v3668_v61, %v3668_v61 }
 0x35e   :  { %1114 = vadd.xlane.f32.xlu1 %v1113_v56  ;;  %v1136_v57 = vadd.f32 %v1128_v44, %v1127_v2  ;;  %v3674_v55 = vpop.f32.mrb[4].mxu0  ;;  %1134 = vadd.xlane.f32.xlu0 %v1133_v42 }
 0x35f   :  { %v1129_v37 = vmul.f32 %v3674_v55, %v3674_v55  ;;  %v3678_v38 = vpop.f32.mrb[5].mxu0 }
 0x360   :  { %v1116_v5 = vadd.f32 %v3678_v38, %v3674_v55  ;;  %v1130_v16 = vmul.f32 %v3678_v38, %v3678_v38 }
 0x362   :  { %1137 = vadd.xlane.f32.xlu1 %v1136_v57  ;;  %v3684_v26 = vpop.f32.mrb[6].mxu0  ;;  %v1139_v33 = vadd.f32 %v1130_v16, %v1129_v37 }
 0x363   :  { %v1131_v36 = vmul.f32 %v3684_v26, %v3684_v26  ;;  %v3688_v35 = vpop.f32.mrb[7].mxu0 }
 0x364   :  { %v1119_v51 = vadd.f32 %v3688_v35, %v3684_v26  ;;  %v1132_v8 = vmul.f32 %v3688_v35, %v3688_v35 }
 0x366   :  { %1117 = vadd.xlane.f32.xlu1 %v1116_v5  ;;  %v1142_v19 = vadd.f32 %v1132_v8, %v1131_v36 }
 0x369   :  { %v3694_v48 = vpop.f32.mrb[0].mxu1 }
 0x36a   :  { %v2274_v60 = vmul.f32 %v3694_v48, %v3694_v48  ;;  %v3698_v21 = vpop.f32.mrb[1].mxu1 }
 0x36b   :  { %v2259_v53 = vadd.f32 %v3698_v21, %v3694_v48  ;;  %v2275_v49 = vmul.f32 %v3698_v21, %v3698_v21 }
 0x36d   :  { %2260 = vadd.xlane.f32.xlu0 %v2259_v53  ;;  %v2282_v1 = vadd.f32 %v2275_v49, %v2274_v60  ;;  %v3704_v43 = vpop.f32.mrb[2].mxu1 }
 0x36e   :  { %v2276_v45 = vmul.f32 %v3704_v43, %v3704_v43  ;;  %v3708_v18 = vpop.f32.mrb[3].mxu1 }
 0x36f   :  { %2283 = vadd.xlane.f32.xlu1 %v2282_v1  ;;  %v2262_v15 = vadd.f32 %v3708_v18, %v3704_v43  ;;  %v2277_v59 = vmul.f32 %v3708_v18, %v3708_v18 }
 0x371   :  { %1140 = vadd.xlane.f32.xlu0 %v1139_v33  ;;  %v3714_v62 = vpop.f32.mrb[4].mxu1  ;;  %v2285_v11 = vadd.f32 %v2277_v59, %v2276_v45 }
 0x372   :  { %v2278_v14 = vmul.f32 %v3714_v62, %v3714_v62  ;;  %v3718_v58 = vpop.f32.mrb[5].mxu1 }
 0x373   :  { %1120 = vadd.xlane.f32.xlu1 %v1119_v51  ;;  %v2265_v40 = vadd.f32 %v3718_v58, %v3714_v62  ;;  %v2279_v28 = vmul.f32 %v3718_v58, %v3718_v58 }
 0x375   :  { %2263 = vadd.xlane.f32.xlu0 %v2262_v15  ;;  %v3724_v50 = vpop.f32.mrb[6].mxu1  ;;  %v2288_v6 = vadd.f32 %v2279_v28, %v2278_v14  ;;  %v2447_v15 = vmov 1   ;;  %v32_v14 = vld [vmem:[%s3805_s2] sm:$0xff] }
 0x376   :  { %v2280_v27 = vmul.f32 %v3724_v50, %v3724_v50  ;;  %v3728_v17 = vpop.f32.mrb[7].mxu1  ;;  %2417 = vset.pattern.permute.xlu0 %v2447_v15 }
 0x377   :  { %v2268_v46 = vadd.f32 %v3728_v17, %v3724_v50  ;;  %v2281_v41 = vmul.f32 %v3728_v17, %v3728_v17 }
 0x379   :  { %v2291_v0 = vadd.f32 %v2281_v41, %v2280_v27  ;;  %2286 = vadd.xlane.f32.xlu0 %v2285_v11  ;;  %2269 = vadd.xlane.f32.xlu1 %v2268_v46 }
 0x37d   :  { %2266 = vadd.xlane.f32.xlu0 %v2265_v40  ;;  %1143 = vadd.xlane.f32.xlu1 %v1142_v19 }
 0x381   :  { %2289 = vadd.xlane.f32.xlu0 %v2288_v6 }
 0x385   :  { %2292 = vadd.xlane.f32.xlu0 %v2291_v0 }
 0x3e7   :  { %v1112_v25 = vpop.xlane.xlu0 %1111 }
 0x3eb   :  { %v1115_v23 = vpop.xlane.xlu1 %1114  ;;  %v1135_v39 = vpop.xlane.xlu0 %1134 }
 0x3ec   :  { %v1122_v47 = vadd.f32 %v1115_v23, %v1112_v25 }
 0x3ef   :  { %v1138_v4 = vpop.xlane.xlu1 %1137 }
 0x3f0   :  { %v1145_v9 = vadd.f32 %v1138_v4, %v1135_v39 }
 0x3f3   :  { %v1118_v34 = vpop.xlane.xlu1 %1117 }
 0x3f4   :  { %v1123_v52 = vadd.f32 %v1122_v47, %v1118_v34 }
 0x3fa   :  { %v2261_v63 = vpop.xlane.xlu0 %2260 }
 0x3fc   :  { %v2284_v30 = vpop.xlane.xlu1 %2283 }
 0x3fe   :  { %v1141_v24 = vpop.xlane.xlu0 %1140 }
 0x3ff   :  { %v1146_v32 = vadd.f32 %v1145_v9, %v1141_v24 }
 0x400   :  { %v1121_v13 = vpop.xlane.xlu1 %1120 }
 0x401   :  { %v1124_v3 = vadd.f32 %v1123_v52, %v1121_v13 }
 0x402   :  { %v2264_v22 = vpop.xlane.xlu0 %2263 }
 0x403   :  { %v1148_v20 = vmul.f32 0.0009765625, %v1124_v3  ;;  %v2271_v42 = vadd.f32 %v2264_v22, %v2261_v63 }
 0x405   :  { %v1150_v37 = vmul.f32 %v1148_v20, %v1148_v20 }
 0x406   :  { %v2270_v54 = vpop.xlane.xlu1 %2269  ;;  %v2287_v31 = vpop.xlane.xlu0 %2286 }
 0x407   :  { %v2294_v36 = vadd.f32 %v2287_v31, %v2284_v30 }
 0x40a   :  { %v1144_v2 = vpop.xlane.xlu1 %1143  ;;  %v2267_v56 = vpop.xlane.xlu0 %2266 }
 0x40b   :  { %v1147_v44 = vadd.f32 %v1146_v32, %v1144_v2  ;;  %v2272_v57 = vadd.f32 %v2271_v42, %v2267_v56 }
 0x40d   :  { %v1149_v5 = vmul.f32 0.0009765625, %v1147_v44  ;;  %v2273_v16 = vadd.f32 %v2272_v57, %v2270_v54 }
 0x40e   :  { %v2290_v33 = vpop.xlane.xlu0 %2289 }
 0x40f   :  { %v1151_v51 = vsub.f32 %v1149_v5, %v1150_v37  ;;  %v2297_v19 = vmul.f32 0.0009765625, %v2273_v16  ;;  %v2295_v60 = vadd.f32 %v2294_v36, %v2290_v33 }
 0x411   :  { %v1152_v8 = vadd.f32 1e-05, %v1151_v51  ;;  %v2299_v1 = vmul.f32 %v2297_v19, %v2297_v19 }
 0x412   :  { %v2293_v53 = vpop.xlane.xlu0 %2292 }
 0x413   :  { %2429 = vrsqrt.f32 %v1152_v8  ;;  %v2296_v49 = vadd.f32 %v2295_v60, %v2293_v53 }
 0x415   :  { %v2298_v45 = vmul.f32 0.0009765625, %v2296_v49 }
 0x417   :  { %v2300_v59 = vsub.f32 %v2298_v45, %v2299_v1 }
 0x419   :  { %v2301_v11 = vadd.f32 1e-05, %v2300_v59 }
 0x41b   :  { %2431 = vrsqrt.f32 %v2301_v11 }
 0x41d   :  { %v2430_v40 = vpop.eup %2429 }
 0x41e   :  { %v1154_v28 = vmul.f32 %v2430_v40, %v32_v14 }
 0x420   :  { %v1155_v6 = vmul.f32 %v1154_v28, %v1148_v20 }
 0x422   :  { %1157 = vrot.lane.b32.xlu1 %v1155_v6, %s2434_s16 }
 0x425   :  { %v2432_v27 = vpop.eup %2431 }
 0x426   :  { %1163 = vperm.xlu1 %2416, %v1154_v28   ;;  %v2303_v46 = vmul.f32 %v2432_v27, %v32_v14 }
 0x428   :  { %v2304_v41 = vmul.f32 %v2303_v46, %v2297_v19 }
 0x42a   :  { %2312 = vperm.xlu1 %2416, %v2303_v46   ;;  %2306 = vrot.lane.b32.xlu0 %v2304_v41, %s2434_s16 }
 0x42e   :  { %2418 = vset.pattern.permute.xlu1 %v2447_v15 }
 0x494   :  { %v1158_v0 = vpop.permute.xlu1 %1157 }
 0x495   :  { %v1160_v12 = vsub.f32 %v32_v14, %v1158_v0 }
 0x497   :  { %1170 = vperm.xlu0 %2417, %v1160_v12  }
 0x49c   :  { %v2307_v23 = vpop.permute.xlu0 %2306 }
 0x49d   :  { %v2309_v25 = vsub.f32 %v32_v14, %v2307_v23 }
 0x49f   :  { %2319 = vperm.xlu1 %2418, %v2309_v25  }
 0x4a5   :  { %v1164_v4 = vpop.permute.xlu1 %1163 }
 0x4a6   :  { %v1166_v39 = vmul.f32 %v1164_v4, %v3654_v29  ;;  %v1167_v34 = vmul.f32 %v1164_v4, %v3658_v10  ;;  %v1179_v63 = vmul.f32 %v1164_v4, %v3664_v7  ;;  %v1180_v30 = vmul.f32 %v1164_v4, %v3668_v61 }
 0x4a7   :  { %v1187_v24 = vmul.f32 %v1164_v4, %v3674_v55  ;;  %v1188_v47 = vmul.f32 %v1164_v4, %v3678_v38  ;;  %v1195_v13 = vmul.f32 %v1164_v4, %v3684_v26  ;;  %v1196_v22 = vmul.f32 %v1164_v4, %v3688_v35 }
 0x4a9   :  { %v2313_v55 = vpop.permute.xlu1 %2312 }
 0x4aa   :  { %v2315_v35 = vmul.f32 %v2313_v55, %v3694_v48  ;;  %v2316_v57 = vmul.f32 %v2313_v55, %v3698_v21  ;;  %v2329_v37 = vmul.f32 %v2313_v55, %v3704_v43  ;;  %v2330_v5 = vmul.f32 %v2313_v55, %v3708_v18 }
 0x4ab   :  { %v2337_v16 = vmul.f32 %v2313_v55, %v3714_v62  ;;  %v2338_v33 = vmul.f32 %v2313_v55, %v3718_v58  ;;  %v2345_v36 = vmul.f32 %v2313_v55, %v3724_v50  ;;  %v2346_v51 = vmul.f32 %v2313_v55, %v3728_v17 }
 0x516   :  { %v1171_v52 = vpop.permute.xlu0 %1170 }
 0x517   :  { %v1173_v3 = vadd.f32 %v1171_v52, %v1166_v39  ;;  %v1174_v54 = vadd.f32 %v1171_v52, %v1167_v34  ;;  %v1181_v31 = vadd.f32 %v1179_v63, %v1171_v52  ;;  %v1182_v9 = vadd.f32 %v1180_v30, %v1171_v52 }
 0x518   :  { %v1189_v29 = vadd.f32 %v1187_v24, %v1171_v52  ;;  %v1190_v32 = vadd.f32 %v1188_v47, %v1171_v52  ;;  %v1197_v10 = vadd.f32 %v1195_v13, %v1171_v52  ;;  %v1198_v20 = vadd.f32 %v1196_v22, %v1171_v52 }
 0x519   :  { %v1175_v7 = vmax.f32 %v1173_v3, 0.0  ;;  %v1176_v42 = vmax.f32 %v1174_v54, 0.0  ;;  %v1183_v61 = vmax.f32 %v1181_v31, 0.0  ;;  %v1184_v2 = vmax.f32 %v1182_v9, 0.0 }
 0x51a   :  { %v1191_v56 = vmax.f32 %v1189_v29, 0.0  ;;  %v1192_v38 = vmax.f32 %v1190_v32, 0.0  ;;  %v1199_v44 = vmax.f32 %v1197_v10, 0.0  ;;  %v1200_v26 = vmax.f32 %v1198_v20, 0.0 }
 0x51b   :  { %1177 = vst [vmem:[%s3806_s3] sm:$0xff] %v1175_v7  ;;  %1178 = vst [vmem:[%s3806_s3 + $0x8] sm:$0xff] %v1176_v42 }
 0x51c   :  { %1185 = vst [vmem:[%s3806_s3 + $0x10] sm:$0xff] %v1183_v61  ;;  %1186 = vst [vmem:[%s3806_s3 + $0x18] sm:$0xff] %v1184_v2 }
 0x51d   :  { %1193 = vst [vmem:[%s3806_s3 + $0x20] sm:$0xff] %v1191_v56  ;;  %1194 = vst [vmem:[%s3806_s3 + $0x28] sm:$0xff] %v1192_v38 }
 0x51e   :  { %1201 = vst [vmem:[%s3806_s3 + $0x30] sm:$0xff] %v1199_v44  ;;  %1202 = vst [vmem:[%s3806_s3 + $0x38] sm:$0xff] %v1200_v26  ;;  %v2320_v8 = vpop.permute.xlu1 %2319 }
 0x51f   :  { %v2322_v19 = vadd.f32 %v2320_v8, %v2315_v35  ;;  %v2323_v60 = vadd.f32 %v2320_v8, %v2316_v57  ;;  %v2331_v53 = vadd.f32 %v2329_v37, %v2320_v8  ;;  %v2332_v49 = vadd.f32 %v2330_v5, %v2320_v8 }
 0x520   :  { %v2339_v48 = vadd.f32 %v2337_v16, %v2320_v8  ;;  %v2340_v1 = vadd.f32 %v2338_v33, %v2320_v8  ;;  %v2347_v21 = vadd.f32 %v2345_v36, %v2320_v8  ;;  %v2348_v45 = vadd.f32 %v2346_v51, %v2320_v8 }
 0x521   :  { %v2324_v43 = vmax.f32 %v2322_v19, 0.0  ;;  %v2325_v15 = vmax.f32 %v2323_v60, 0.0  ;;  %v2333_v18 = vmax.f32 %v2331_v53, 0.0  ;;  %v2334_v59 = vmax.f32 %v2332_v49, 0.0 }
 0x522   :  { %v2341_v62 = vmax.f32 %v2339_v48, 0.0  ;;  %v2342_v11 = vmax.f32 %v2340_v1, 0.0  ;;  %v2349_v58 = vmax.f32 %v2347_v21, 0.0  ;;  %v2350_v14 = vmax.f32 %v2348_v45, 0.0 }
 0x523   :  { %2377 = vst [vmem:[%s3806_s3 + $0x40] sm:$0xff] %v2324_v43  ;;  %2378 = vst [vmem:[%s3806_s3 + $0x48] sm:$0xff] %v2325_v15 }
 0x524   :  { %2379 = vst [vmem:[%s3806_s3 + $0x50] sm:$0xff] %v2333_v18  ;;  %2380 = vst [vmem:[%s3806_s3 + $0x58] sm:$0xff] %v2334_v59 }
 0x525   :  { %2381 = vst [vmem:[%s3806_s3 + $0x60] sm:$0xff] %v2341_v62  ;;  %2382 = vst [vmem:[%s3806_s3 + $0x68] sm:$0xff] %v2342_v11 }
 0x526   :  { %2383 = vst [vmem:[%s3806_s3 + $0x70] sm:$0xff] %v2349_v58  ;;  %2384 = vst [vmem:[%s3806_s3 + $0x78] sm:$0xff] %v2350_v14 }

</bundles_post_ra>
